<compile_context>
chip_gen: v6e
topology: v6e:2x2x1
jax: 0.10.0
libtpu: 0.0.40
codegen_flags: <defaults>
</compile_context>

<pallas_src>
import functools

import jax
import jax.numpy as jnp
from jax.experimental import pallas as pl
from jax.experimental.pallas import tpu as pltpu

DIM_IN = 2
WIDTH = 40
DEPTH = 4
DIM_OUT = 1


def _ritznet_kernel(x_ref, win_ref, bin_ref, wh_ref, bh_ref, woutT_ref,
                    bout_ref, o_ref, *, bf16_dots):
    # x_ref:     (DIM_IN, TM)          batch on lanes
    # win_ref:   (WIDTH, DIM_IN)       bin_ref:  (WIDTH, 1)
    # wh_ref:    (DEPTH, WIDTH, WIDTH) bh_ref:   (DEPTH, WIDTH, 1)
    # woutT_ref: (WIDTH, DIM_OUT)      bout_ref: (DIM_OUT, 1)
    # o_ref:     (DIM_OUT, TM)         lane-dense output
    x = x_ref[...]
    win = win_ref[...]

    # Input layer: the K=2 contraction as two broadcast FMAs on the VPU.
    h = win[:, 0:1] * x[0:1, :] + win[:, 1:2] * x[1:2, :] + bin_ref[...]
    h = jnp.maximum(h * h * h, 0.0)          # relu(h ** 3)

    # Residual hidden stack (DEPTH is a small static constant -> unrolled).
    # Weights are in PyTorch (out, in) layout, so layer(h) == W @ H + b here.
    for i in range(DEPTH):
        w = wh_ref[i]
        if bf16_dots:
            # Cast only the dot operands; accumulation and all elementwise
            # math stay f32 (v5e VPU/EUP has no bf16).
            t = jnp.dot(w.astype(jnp.bfloat16), h.astype(jnp.bfloat16),
                        preferred_element_type=jnp.float32)
        else:
            t = jnp.dot(w, h, preferred_element_type=jnp.float32)
        t = t + bh_ref[i]
        h = jnp.maximum(t, 0.0) + h

    # Output layer (DIM_OUT == 1): VPU multiply by the (WIDTH, 1) weight
    # column + XLU sublane reduction instead of a near-empty MXU pass.
    o_ref[...] = (jnp.sum(h * woutT_ref[...], axis=0, keepdims=True)
                  + bout_ref[...])


def _round_up(v, m):
    return ((v + m - 1) // m) * m


def _num_tensorcores():
    """TensorCores a single Pallas grid can span: 2 on v7x, 1 on v5e/v6e."""
    try:
        kind = jax.devices()[0].device_kind.lower()
    except Exception:
        return 1
    if "v7" in kind:
        return 2
    return 1


def _choose_tiling(N, tm_request, num_cores):
    """Pick a lane-aligned batch tile and grid length.

    Large tiles amortize the ~0.35 us/grid-step overhead.  On 2-TC chips
    (v7x) keep >= 2 grid steps (when the batch allows) and round the grid
    length to an even number so ("parallel",) splits evenly across cores.
    Single-TC chips use one big tile when the batch fits."""
    tm = min(tm_request, _round_up(N, 128))
    tm = max(128, _round_up(tm, 128))
    if num_cores >= 2 and N >= num_cores * 128:
        tm = min(tm, _round_up(pl.cdiv(N, num_cores), 128))
        grid = _round_up(pl.cdiv(N, tm), num_cores)
    else:
        grid = pl.cdiv(N, tm)
    return tm, tm * grid, grid


def ritznet_forward(x, params, *, tm=4096, num_cores=None, bf16_dots=False,
                    transposed_input=False):
    """RitzNet forward.

    x: (N, DIM_IN) float32  (or (DIM_IN, N) if transposed_input=True, which
       skips the wrapper-side transpose HBM round-trip)
    returns (N, DIM_OUT) float32.
    """
    if transposed_input:
        xt = x
        N = x.shape[1]
    else:
        N = x.shape[0]
        xt = x.T                              # (DIM_IN, N), batch on lanes

    if num_cores is None:
        num_cores = _num_tensorcores()

    tm, n_pad, grid_len = _choose_tiling(N, tm, num_cores)
    if n_pad != N:
        xt = jnp.pad(xt, ((0, 0), (0, n_pad - N)))

    win, bin_, wh, bh, wout, bout = (
        params["win"], params["bin"], params["wh"], params["bh"],
        params["wout"], params["bout"])
    woutT = wout.T                            # (WIDTH, DIM_OUT) column

    # Advisory cost hint so XLA schedules the surrounding transpose/pad/slice
    # ops sensibly around the custom call.
    flops = 2 * N * (DIM_IN * WIDTH + DEPTH * WIDTH * WIDTH + WIDTH * DIM_OUT)
    bytes_accessed = 4 * (N * (DIM_IN + DIM_OUT)
                          + WIDTH * (DIM_IN + 1)
                          + DEPTH * WIDTH * (WIDTH + 1)
                          + WIDTH * DIM_OUT + DIM_OUT)

    kernel = functools.partial(_ritznet_kernel, bf16_dots=bf16_dots)

    out = pl.pallas_call(
        kernel,
        out_shape=jax.ShapeDtypeStruct((DIM_OUT, n_pad), jnp.float32),
        grid_spec=pltpu.PrefetchScalarGridSpec(
            num_scalar_prefetch=0,
            grid=(grid_len,),
            in_specs=[
                pl.BlockSpec((DIM_IN, tm), lambda i: (0, i)),
                # Weights/biases are grid-invariant (constant index_map):
                # Pallas DMAs them once and reuses them across grid steps
                # (~26 KiB total, negligible VMEM).
                pl.BlockSpec((WIDTH, DIM_IN), lambda i: (0, 0)),
                pl.BlockSpec((WIDTH, 1), lambda i: (0, 0)),
                pl.BlockSpec((DEPTH, WIDTH, WIDTH), lambda i: (0, 0, 0)),
                pl.BlockSpec((DEPTH, WIDTH, 1), lambda i: (0, 0, 0)),
                pl.BlockSpec((WIDTH, DIM_OUT), lambda i: (0, 0)),
                pl.BlockSpec((DIM_OUT, 1), lambda i: (0, 0)),
            ],
            out_specs=pl.BlockSpec((DIM_OUT, tm), lambda i: (0, i)),
        ),
        compiler_params=pltpu.CompilerParams(
            dimension_semantics=("parallel",)),
        cost_estimate=pl.CostEstimate(
            flops=int(flops),
            transcendentals=0,
            bytes_accessed=int(bytes_accessed)),
    )(xt, win, bin_, wh, bh, woutT, bout)

    return out[:, :N].T                       # (N, DIM_OUT)


def init_params(key):
    """Deterministic init mimicking nn.Linear's U(-1/sqrt(fan_in), 1/sqrt(fan_in)).

    Weights are stored in PyTorch (out_features, in_features) layout; biases
    are stored as (out_features, 1) columns for the batch-on-lanes kernel."""
    ks = jax.random.split(key, 2 + 2 * DEPTH + 2)

    def uni(k, shape, fan_in):
        bound = 1.0 / jnp.sqrt(jnp.float32(fan_in))
        return jax.random.uniform(k, shape, jnp.float32, -bound, bound)

    win = uni(ks[0], (WIDTH, DIM_IN), DIM_IN)
    bin_ = uni(ks[1], (WIDTH, 1), DIM_IN)
    wh = jnp.stack([uni(ks[2 + i], (WIDTH, WIDTH), WIDTH) for i in range(DEPTH)])
    bh = jnp.stack(
        [uni(ks[2 + DEPTH + i], (WIDTH, 1), WIDTH) for i in range(DEPTH)])
    wout = uni(ks[2 + 2 * DEPTH], (DIM_OUT, WIDTH), WIDTH)
    bout = uni(ks[3 + 2 * DEPTH], (DIM_OUT, 1), WIDTH)
    return dict(win=win, bin=bin_, wh=wh, bh=bh, wout=wout, bout=bout)


def ritznet_reference(x, params):
    """Pure-JAX reference in standard (batch, features) orientation."""
    h = x @ params["win"].T + params["bin"].T
    h = jnp.maximum(h ** 3, 0.0)
    for i in range(DEPTH):
        t = h @ params["wh"][i].T + params["bh"][i].T
        h = jnp.maximum(t, 0.0) + h
    return h @ params["wout"].T + params["bout"].T


if __name__ == "__main__":
    key = jax.random.PRNGKey(0)
    kp, kx = jax.random.split(key)
    params = init_params(kp)

    # Non-multiple-of-128 batch of 2-D collocation points: exercises the
    # padding + tail-slice path and (on v7x) the even 2-step grid split.
    N = 1000
    x = jax.random.uniform(kx, (N, DIM_IN), jnp.float32, -1.0, 1.0)

    ref = ritznet_reference(x, params)

    # Default f32-MXU path: must match the f32 reference tightly.
    out = jax.block_until_ready(ritznet_forward(x, params))
    assert out.shape == (N, DIM_OUT)
    assert jnp.allclose(out, ref, atol=2e-5, rtol=2e-5), "f32 mismatch vs reference"

    # Optional bf16-MXU-input path: sanity check against the f32 reference
    # with a tolerance that accounts for bf16 operand rounding in the dots.
    out_bf16 = jax.block_until_ready(ritznet_forward(x, params, bf16_dots=True))
    assert out_bf16.shape == (N, DIM_OUT)
    scale = float(jnp.max(jnp.abs(ref))) + 1e-6
    err = float(jnp.max(jnp.abs(out_bf16 - ref)))
    assert err <= 0.1 * scale + 1e-3, (
        f"bf16-dot path deviates too much: max_err={err}, ref_scale={scale}")

    print("KERNEL_OK")
</pallas_src>

<mosaic_0001>
module attributes {stable_mosaic.version = 11 : i64} {
  func.func @_ritznet_kernel(%arg0: i32, %arg1: memref<2x1024xf32, #tpu.memory_space<vmem>>, %arg2: memref<40x2xf32, #tpu.memory_space<vmem>>, %arg3: memref<40x1xf32, #tpu.memory_space<vmem>>, %arg4: memref<4x40x40xf32, #tpu.memory_space<vmem>>, %arg5: memref<4x40x1xf32, #tpu.memory_space<vmem>>, %arg6: memref<40x1xf32, #tpu.memory_space<vmem>>, %arg7: memref<1x1xf32, #tpu.memory_space<vmem>>, %arg8: memref<1x1024xf32, #tpu.memory_space<vmem>>) attributes {dimension_semantics = [#tpu.dimension_semantics<parallel>], iteration_bounds = array<i64: 1>, scalar_prefetch = 0 : i64, scratch_operands = 0 : i64, tpu.core_type = #tpu.core_type<tc>, window_params = [{transform_indices = @transform_0, window_bounds = array<i64: 2, 1024>}, {pipeline_mode = #tpu.pipeline_mode<synchronous>, transform_indices = @transform_1, window_bounds = array<i64: 40, 2>}, {pipeline_mode = #tpu.pipeline_mode<synchronous>, transform_indices = @transform_2, window_bounds = array<i64: 40, 1>}, {pipeline_mode = #tpu.pipeline_mode<synchronous>, transform_indices = @transform_3, window_bounds = array<i64: 4, 40, 40>}, {pipeline_mode = #tpu.pipeline_mode<synchronous>, transform_indices = @transform_4, window_bounds = array<i64: 4, 40, 1>}, {pipeline_mode = #tpu.pipeline_mode<synchronous>, transform_indices = @transform_5, window_bounds = array<i64: 40, 1>}, {pipeline_mode = #tpu.pipeline_mode<synchronous>, transform_indices = @transform_6, window_bounds = array<i64: 1, 1>}, {transform_indices = @transform_7, window_bounds = array<i64: 1, 1024>}]} {
    %c0 = arith.constant 0 : index
    %c0_0 = arith.constant 0 : index
    %0 = vector.load %arg1[%c0, %c0_0] : memref<2x1024xf32, #tpu.memory_space<vmem>>, vector<2x1024xf32>
    %c0_1 = arith.constant 0 : index
    %c0_2 = arith.constant 0 : index
    %1 = vector.load %arg2[%c0_1, %c0_2] : memref<40x2xf32, #tpu.memory_space<vmem>>, vector<40x2xf32>
    %2 = vector.extract_strided_slice %1 {offsets = [0, 0], sizes = [40, 1], strides = [1, 1]} : vector<40x2xf32> to vector<40x1xf32>
    %3 = vector.extract_strided_slice %0 {offsets = [0, 0], sizes = [1, 1024], strides = [1, 1]} : vector<2x1024xf32> to vector<1x1024xf32>
    %4 = vector.broadcast %2 : vector<40x1xf32> to vector<40x1024xf32>
    %5 = vector.broadcast %3 : vector<1x1024xf32> to vector<40x1024xf32>
    %6 = arith.mulf %4, %5 : vector<40x1024xf32>
    %7 = vector.extract_strided_slice %1 {offsets = [0, 1], sizes = [40, 1], strides = [1, 1]} : vector<40x2xf32> to vector<40x1xf32>
    %8 = vector.extract_strided_slice %0 {offsets = [1, 0], sizes = [1, 1024], strides = [1, 1]} : vector<2x1024xf32> to vector<1x1024xf32>
    %9 = vector.broadcast %7 : vector<40x1xf32> to vector<40x1024xf32>
    %10 = vector.broadcast %8 : vector<1x1024xf32> to vector<40x1024xf32>
    %11 = arith.mulf %9, %10 : vector<40x1024xf32>
    %12 = arith.addf %6, %11 : vector<40x1024xf32>
    %c0_3 = arith.constant 0 : index
    %c0_4 = arith.constant 0 : index
    %13 = vector.load %arg3[%c0_3, %c0_4] : memref<40x1xf32, #tpu.memory_space<vmem>>, vector<40x1xf32>
    %14 = vector.broadcast %13 : vector<40x1xf32> to vector<40x1024xf32>
    %15 = arith.addf %12, %14 : vector<40x1024xf32>
    %16 = arith.mulf %15, %15 : vector<40x1024xf32>
    %17 = arith.mulf %16, %15 : vector<40x1024xf32>
    %cst = arith.constant 0.000000e+00 : f32
    %18 = vector.broadcast %cst : f32 to vector<40x1024xf32>
    %19 = arith.maximumf %17, %18 : vector<40x1024xf32>
    %c0_5 = arith.constant 0 : index
    %c0_6 = arith.constant 0 : index
    %c0_7 = arith.constant 0 : index
    %20 = vector.load %arg4[%c0_5, %c0_6, %c0_7] : memref<4x40x40xf32, #tpu.memory_space<vmem>>, vector<1x40x40xf32>
    %21 = vector.shape_cast %20 : vector<1x40x40xf32> to vector<40x40xf32>
    %cst_8 = arith.constant dense<0.000000e+00> : vector<40x1024xf32>
    %22 = tpu.matmul %21, %19, %cst_8 {dimension_numbers = #tpu.dot_dimension_numbers<[1], [0], [0], [1], [0, 0, 1, 1], [], []>} : vector<40x40xf32>, vector<40x1024xf32>, vector<40x1024xf32> -> vector<40x1024xf32>
    %c0_9 = arith.constant 0 : index
    %c0_10 = arith.constant 0 : index
    %c0_11 = arith.constant 0 : index
    %23 = vector.load %arg5[%c0_9, %c0_10, %c0_11] : memref<4x40x1xf32, #tpu.memory_space<vmem>>, vector<1x40x1xf32>
    %24 = vector.shape_cast %23 : vector<1x40x1xf32> to vector<40x1xf32>
    %25 = vector.broadcast %24 : vector<40x1xf32> to vector<40x1024xf32>
    %26 = arith.addf %22, %25 : vector<40x1024xf32>
    %cst_12 = arith.constant 0.000000e+00 : f32
    %27 = vector.broadcast %cst_12 : f32 to vector<40x1024xf32>
    %28 = arith.maximumf %26, %27 : vector<40x1024xf32>
    %29 = arith.addf %28, %19 : vector<40x1024xf32>
    %c1 = arith.constant 1 : index
    %c0_13 = arith.constant 0 : index
    %c0_14 = arith.constant 0 : index
    %30 = vector.load %arg4[%c1, %c0_13, %c0_14] : memref<4x40x40xf32, #tpu.memory_space<vmem>>, vector<1x40x40xf32>
    %31 = vector.shape_cast %30 : vector<1x40x40xf32> to vector<40x40xf32>
    %cst_15 = arith.constant dense<0.000000e+00> : vector<40x1024xf32>
    %32 = tpu.matmul %31, %29, %cst_15 {dimension_numbers = #tpu.dot_dimension_numbers<[1], [0], [0], [1], [0, 0, 1, 1], [], []>} : vector<40x40xf32>, vector<40x1024xf32>, vector<40x1024xf32> -> vector<40x1024xf32>
    %c1_16 = arith.constant 1 : index
    %c0_17 = arith.constant 0 : index
    %c0_18 = arith.constant 0 : index
    %33 = vector.load %arg5[%c1_16, %c0_17, %c0_18] : memref<4x40x1xf32, #tpu.memory_space<vmem>>, vector<1x40x1xf32>
    %34 = vector.shape_cast %33 : vector<1x40x1xf32> to vector<40x1xf32>
    %35 = vector.broadcast %34 : vector<40x1xf32> to vector<40x1024xf32>
    %36 = arith.addf %32, %35 : vector<40x1024xf32>
    %cst_19 = arith.constant 0.000000e+00 : f32
    %37 = vector.broadcast %cst_19 : f32 to vector<40x1024xf32>
    %38 = arith.maximumf %36, %37 : vector<40x1024xf32>
    %39 = arith.addf %38, %29 : vector<40x1024xf32>
    %c2 = arith.constant 2 : index
    %c0_20 = arith.constant 0 : index
    %c0_21 = arith.constant 0 : index
    %40 = vector.load %arg4[%c2, %c0_20, %c0_21] : memref<4x40x40xf32, #tpu.memory_space<vmem>>, vector<1x40x40xf32>
    %41 = vector.shape_cast %40 : vector<1x40x40xf32> to vector<40x40xf32>
    %cst_22 = arith.constant dense<0.000000e+00> : vector<40x1024xf32>
    %42 = tpu.matmul %41, %39, %cst_22 {dimension_numbers = #tpu.dot_dimension_numbers<[1], [0], [0], [1], [0, 0, 1, 1], [], []>} : vector<40x40xf32>, vector<40x1024xf32>, vector<40x1024xf32> -> vector<40x1024xf32>
    %c2_23 = arith.constant 2 : index
    %c0_24 = arith.constant 0 : index
    %c0_25 = arith.constant 0 : index
    %43 = vector.load %arg5[%c2_23, %c0_24, %c0_25] : memref<4x40x1xf32, #tpu.memory_space<vmem>>, vector<1x40x1xf32>
    %44 = vector.shape_cast %43 : vector<1x40x1xf32> to vector<40x1xf32>
    %45 = vector.broadcast %44 : vector<40x1xf32> to vector<40x1024xf32>
    %46 = arith.addf %42, %45 : vector<40x1024xf32>
    %cst_26 = arith.constant 0.000000e+00 : f32
    %47 = vector.broadcast %cst_26 : f32 to vector<40x1024xf32>
    %48 = arith.maximumf %46, %47 : vector<40x1024xf32>
    %49 = arith.addf %48, %39 : vector<40x1024xf32>
    %c3 = arith.constant 3 : index
    %c0_27 = arith.constant 0 : index
    %c0_28 = arith.constant 0 : index
    %50 = vector.load %arg4[%c3, %c0_27, %c0_28] : memref<4x40x40xf32, #tpu.memory_space<vmem>>, vector<1x40x40xf32>
    %51 = vector.shape_cast %50 : vector<1x40x40xf32> to vector<40x40xf32>
    %cst_29 = arith.constant dense<0.000000e+00> : vector<40x1024xf32>
    %52 = tpu.matmul %51, %49, %cst_29 {dimension_numbers = #tpu.dot_dimension_numbers<[1], [0], [0], [1], [0, 0, 1, 1], [], []>} : vector<40x40xf32>, vector<40x1024xf32>, vector<40x1024xf32> -> vector<40x1024xf32>
    %c3_30 = arith.constant 3 : index
    %c0_31 = arith.constant 0 : index
    %c0_32 = arith.constant 0 : index
    %53 = vector.load %arg5[%c3_30, %c0_31, %c0_32] : memref<4x40x1xf32, #tpu.memory_space<vmem>>, vector<1x40x1xf32>
    %54 = vector.shape_cast %53 : vector<1x40x1xf32> to vector<40x1xf32>
    %55 = vector.broadcast %54 : vector<40x1xf32> to vector<40x1024xf32>
    %56 = arith.addf %52, %55 : vector<40x1024xf32>
    %cst_33 = arith.constant 0.000000e+00 : f32
    %57 = vector.broadcast %cst_33 : f32 to vector<40x1024xf32>
    %58 = arith.maximumf %56, %57 : vector<40x1024xf32>
    %59 = arith.addf %58, %49 : vector<40x1024xf32>
    %c0_34 = arith.constant 0 : index
    %c0_35 = arith.constant 0 : index
    %60 = vector.load %arg6[%c0_34, %c0_35] : memref<40x1xf32, #tpu.memory_space<vmem>>, vector<40x1xf32>
    %61 = vector.broadcast %60 : vector<40x1xf32> to vector<40x1024xf32>
    %62 = arith.mulf %59, %61 : vector<40x1024xf32>
    %cst_36 = arith.constant dense<0.000000e+00> : vector<1024xf32>
    %63 = vector.multi_reduction <add>, %62, %cst_36 [0] : vector<40x1024xf32> to vector<1024xf32>
    %64 = vector.shape_cast %63 : vector<1024xf32> to vector<1x1024xf32>
    %c0_37 = arith.constant 0 : index
    %c0_38 = arith.constant 0 : index
    %65 = vector.load %arg7[%c0_37, %c0_38] : memref<1x1xf32, #tpu.memory_space<vmem>>, vector<1x1xf32>
    %66 = vector.broadcast %65 : vector<1x1xf32> to vector<1x1024xf32>
    %67 = arith.addf %64, %66 : vector<1x1024xf32>
    %c0_39 = arith.constant 0 : index
    %c0_40 = arith.constant 0 : index
    %68 = vector.load %arg8[%c0_39, %c0_40] : memref<1x1024xf32, #tpu.memory_space<vmem>>, vector<1x1024xf32>
    tpu.vector_store %arg8[%c0_39, %c0_40], %67 {strides = array<i32>} : memref<1x1024xf32, #tpu.memory_space<vmem>>, vector<1x1024xf32>,
    return
  }
  func.func @transform_0(%arg0: i32) -> (i32, i32) {
    %c0_i32 = arith.constant 0 : i32
    %c0_i32_0 = arith.constant 0 : i32
    return %c0_i32, %arg0 : i32, i32
  }
  func.func @transform_1(%arg0: i32) -> (i32, i32) {
    %c0_i32 = arith.constant 0 : i32
    %c0_i32_0 = arith.constant 0 : i32
    %c0_i32_1 = arith.constant 0 : i32
    return %c0_i32, %c0_i32_0 : i32, i32
  }
  func.func @transform_2(%arg0: i32) -> (i32, i32) {
    %c0_i32 = arith.constant 0 : i32
    %c0_i32_0 = arith.constant 0 : i32
    %c0_i32_1 = arith.constant 0 : i32
    return %c0_i32, %c0_i32_0 : i32, i32
  }
  func.func @transform_3(%arg0: i32) -> (i32, i32, i32) {
    %c0_i32 = arith.constant 0 : i32
    %c0_i32_0 = arith.constant 0 : i32
    %c0_i32_1 = arith.constant 0 : i32
    %c0_i32_2 = arith.constant 0 : i32
    return %c0_i32, %c0_i32_0, %c0_i32_1 : i32, i32, i32
  }
  func.func @transform_4(%arg0: i32) -> (i32, i32, i32) {
    %c0_i32 = arith.constant 0 : i32
    %c0_i32_0 = arith.constant 0 : i32
    %c0_i32_1 = arith.constant 0 : i32
    %c0_i32_2 = arith.constant 0 : i32
    return %c0_i32, %c0_i32_0, %c0_i32_1 : i32, i32, i32
  }
  func.func @transform_5(%arg0: i32) -> (i32, i32) {
    %c0_i32 = arith.constant 0 : i32
    %c0_i32_0 = arith.constant 0 : i32
    %c0_i32_1 = arith.constant 0 : i32
    return %c0_i32, %c0_i32_0 : i32, i32
  }
  func.func @transform_6(%arg0: i32) -> (i32, i32) {
    %c0_i32 = arith.constant 0 : i32
    %c0_i32_0 = arith.constant 0 : i32
    %c0_i32_1 = arith.constant 0 : i32
    return %c0_i32, %c0_i32_0 : i32, i32
  }
  func.func @transform_7(%arg0: i32) -> (i32, i32) {
    %c0_i32 = arith.constant 0 : i32
    %c0_i32_0 = arith.constant 0 : i32
    return %c0_i32, %arg0 : i32, i32
  }
}

</mosaic_0001>

<bundles_post_ra>
// kernel: tpu_custom_call.1
= control target key start
LH: loop header
LB: loop body
LE: loop exit
PB: predicated region body
PF: predicated region fallthrough
CT: control target
= control target key end

     0   :  { %s4901_s0 = inlined_call_operand.vmem [shape: f32[2,1024], index: 0, kind: input, shape index: {}]   ;;  %s4902_s1 = inlined_call_operand.vmem [shape: f32[40,2], index: 1, kind: input, shape index: {}]   ;;  %s4903_s2 = inlined_call_operand.vmem [shape: f32[40,1], index: 2, kind: input, shape index: {}]   ;;  %s4904_s3 = inlined_call_operand.vmem [shape: f32[4,40,40], index: 3, kind: input, shape index: {}]   ;;  %s4905_s4 = inlined_call_operand.vmem [shape: f32[4,40,1], index: 4, kind: input, shape index: {}]   ;;  %s4906_s5 = inlined_call_operand.vmem [shape: f32[40,1], index: 5, kind: input, shape index: {}]   ;;  %s4907_s6 = inlined_call_operand.<no memory space> [shape: f32[1,1], index: 6, kind: input, shape index: {}]   ;;  %s4908_s7 = inlined_call_operand.hbm [shape: f32[1,1024], index: 7, kind: output, shape index: {}]  }
   0x1   :  { %v12_v0 = vstv %s4907_s6 }
   0x2   :  { %13 = vst [vmem:[#allocation2] sm:$0x1] %v12_v0 }
   0x3   :  { %v35_v1 = vld [vmem:[%s4902_s1 + $0x20] sm:$0xff]  ;;  %v34_v2 = vld [vmem:[%s4902_s1 + $0x18] sm:$0xff]  ;;  %v2971_v3 = vmov 1   ;;  %v2972_v4 = vmov 0   ;;  %v33_v5 = vld [vmem:[%s4902_s1 + $0x10] sm:$0xff] }
   0x4   :  { %2940 = vset.pattern.permute.xlu0 %v2971_v3  ;;  %2941 = vset.pattern.permute.xlu1 %v2972_v4  ;;  %v32_v6 = vld [vmem:[%s4902_s1 + $0x8] sm:$0xff] }
   0x5   :  { %192 = vperm.xlu0 %2940, %v35_v1   ;;  %53 = vperm.xlu1 %2941, %v34_v2  }
   0x9   :  { %2942 = vset.pattern.permute.xlu1 %v2971_v3  ;;  %184 = vperm.xlu0 %2940, %v33_v5  }
   0xa   :  { %188 = vperm.xlu1 %2942, %v34_v2  }
   0xd   :  { %2944 = vset.pattern.permute.xlu0 %v2972_v4 }
   0xe   :  { %2943 = vset.pattern.permute.xlu1 %v2972_v4  ;;  %58 = vperm.xlu0 %2944, %v35_v1  }
   0xf   :  { %48 = vperm.xlu1 %2943, %v33_v5  }
  0x10   :  { %14 = vsyncpa [#allocation4], 0  ;;  %v351_v7 = vld [vmem:[%s4903_s2 + $0x20] sm:$0xff]  ;;  %v349_v9 = vld [vmem:[%s4903_s2 + $0x10] sm:$0xff]  ;;  %v4909_v19 = vmov 0.0   ;;  %v63_v40 = vlaneseq  ;;  %vm572_vm0 = vcmask 326656  }
  0x11   :  { %v31_v8 = vld [vmem:[%s4902_s1] sm:$0xff]  ;;  %v350_v10 = vld [vmem:[%s4903_s2 + $0x18] sm:$0xff]  ;;  %v543_v13 = vld [vmem:[%s4905_s4 + $0x8] sm:$0xff]  ;;  %652 = vmatprep.mubr.f32.mxu0 %v4909_v19  ;;  %747 = vmatprep.mubr.f32.mxu1 %v4909_v19 }
  0x12   :  { %43 = vperm.xlu0 %2944, %v32_v6   ;;  %v347_v11 = vld [vmem:[%s4903_s2] sm:$0xff]  ;;  %v545_v12 = vld [vmem:[%s4905_s4 + $0x18] sm:$0xff]  ;;  %v348_v14 = vld [vmem:[%s4903_s2 + $0x8] sm:$0xff]  ;;  %v3126_v41 = vshrl.u32 %v63_v40, 7 }
  0x13   :  { %374 = vperm.xlu1 %2943, %v351_v7   ;;  %v2854_v15 = vld [vmem:[%s4905_s4 + $0x48] sm:$0xff]  ;;  %v546_v16 = vld [vmem:[%s4905_s4 + $0x20] sm:$0xff]  ;;  %v2852_v17 = vld [vmem:[%s4905_s4 + $0x38] sm:$0xff] }
  0x14   :  { %v544_v18 = vld [vmem:[%s4905_s4 + $0x10] sm:$0xff]  ;;  %v2850_v20 = vld [vmem:[%s4905_s4 + $0x28] sm:$0xff]  ;;  %v542_v21 = vld [vmem:[%s4905_s4] sm:$0xff]  ;;  %5017 = vst [vmem:[#allocation6_spill] sm:$0xff] %v3126_v41  ;;  %v69_v42 = vsub.s32 2, %v3126_v41  ;;  %v3133_v44 = vsub.s32 0, %v3126_v41 }
  0x15   :  { %v2883_v22 = vld [vmem:[%s4905_s4 + $0x68] sm:$0xff]  ;;  %v2853_v23 = vld [vmem:[%s4905_s4 + $0x40] sm:$0xff]  ;;  %v2881_v24 = vld [vmem:[%s4905_s4 + $0x58] sm:$0xff]  ;;  %v201_v45 = vsub.s32 3, %v3126_v41  ;;  %v77_v46 = vsub.s32 6, %v3126_v41  ;;  %v209_v47 = vsub.s32 7, %v3126_v41 }
  0x16   :  { %38 = vperm.xlu0 %2944, %v31_v8   ;;  %v2851_v25 = vld [vmem:[%s4905_s4 + $0x30] sm:$0xff]  ;;  %v2910_v26 = vld [vmem:[%s4905_s4 + $0x78] sm:$0xff]  ;;  %v2912_v28 = vld [vmem:[%s4905_s4 + $0x88] sm:$0xff]  ;;  %5018 = vst [vmem:[#allocation7_spill] sm:$0xff] %v3133_v44  ;;  %v197_v48 = vsub.s32 1, %v3126_v41  ;;  %v73_v49 = vsub.s32 4, %v3126_v41 }
  0x17   :  { %2945 = vset.pattern.permute.xlu1 %v2971_v3  ;;  %v2884_v27 = vld [vmem:[%s4905_s4 + $0x70] sm:$0xff]  ;;  %v2882_v29 = vld [vmem:[%s4905_s4 + $0x60] sm:$0xff]  ;;  %v2914_v30 = vld [vmem:[%s4905_s4 + $0x98] sm:$0xff]  ;;  %v205_v50 = vsub.s32 5, %v3126_v41 }
  0x18   :  { %180 = vperm.xlu1 %2945, %v32_v6   ;;  %v2880_v31 = vld [vmem:[%s4905_s4 + $0x50] sm:$0xff]  ;;  %v2585_v32 = vld [vmem:[%s4906_s5 + $0x8] sm:$0xff]  ;;  %v2911_v33 = vld [vmem:[%s4905_s4 + $0x80] sm:$0xff] }
  0x19   :  { %v2587_v34 = vld [vmem:[%s4906_s5 + $0x18] sm:$0xff]  ;;  %v2913_v35 = vld [vmem:[%s4905_s4 + $0x90] sm:$0xff]  ;;  %v2734_v36 = vld [vmem:[#allocation2] sm:$0x1] }
  0x1a   :  { %364 = vperm.xlu0 %2944, %v349_v9   ;;  %v2584_v37 = vld [vmem:[%s4906_s5] sm:$0xff]  ;;  %v2586_v38 = vld [vmem:[%s4906_s5 + $0x10] sm:$0xff]  ;;  %v30_v51 = vld [vmem:[%s4901_s0 + $0x8] sm:$0xff] }
  0x1b   :  { %v2588_v39 = vld [vmem:[%s4906_s5 + $0x20] sm:$0xff]  ;;  %v86_v60 = vrot.slane %v30_v51, %v69_v42  ;;  %v90_v61 = vrot.slane %v30_v51, %v73_v49  ;;  %v218_v62 = vrot.slane %v30_v51, %v201_v45  ;;  %v94_v63 = vrot.slane %v30_v51, %v77_v46 }
  0x1c   :  { %2946 = vset.pattern.permute.xlu1 %v2972_v4  ;;  %v29_v43 = vld [vmem:[%s4901_s0] sm:$0xff]  ;;  %v82_v0 = vrot.slane %v30_v51, %v3133_v44  ;;  %v222_v2 = vrot.slane %v30_v51, %v205_v50 }
  0x1d   :  { %369 = vperm.xlu1 %2946, %v350_v10   ;;  %v70_v52 = vrot.slane %v29_v43, %v69_v42  ;;  %v202_v53 = vrot.slane %v29_v43, %v201_v45  ;;  %v78_v54 = vrot.slane %v29_v43, %v77_v46  ;;  %v210_v55 = vrot.slane %v29_v43, %v209_v47 }
  0x1e   :  { %354 = vperm.xlu0 %2944, %v347_v11   ;;  %v66_v56 = vrot.slane %v29_v43, %v3133_v44  ;;  %v198_v57 = vrot.slane %v29_v43, %v197_v48  ;;  %v74_v58 = vrot.slane %v29_v43, %v73_v49  ;;  %v206_v59 = vrot.slane %v29_v43, %v205_v50 }
  0x1f   :  { %v3147_v1 = vrot.slane %v70_v52, %v3133_v44  ;;  %v3149_v5 = vrot.slane %v202_v53, %v197_v48  ;;  %v3152_v6 = vrot.slane %v78_v54, %v3133_v44  ;;  %v3154_v7 = vrot.slane %v210_v55, %v197_v48 }
  0x20   :  { %v3159_v9 = vrot.slane %v198_v57, %v197_v48  ;;  %v3162_v10 = vrot.slane %v74_v58, %v3133_v44  ;;  %v3164_v11 = vrot.slane %v206_v59, %v197_v48 }
  0x21   :  { %2947 = vset.pattern.permute.xlu1 %v2971_v3  ;;  %v226_v3 = vrot.slane %v30_v51, %v209_v47 }
  0x22   :  { %176 = vperm.xlu1 %2947, %v31_v8   ;;  %564 = vperm.xlu0 %2944, %v545_v12   ;;  %v3157_v8 = vrot.slane %v66_v56, %v3133_v44  ;;  %v3167_v12 = vrot.slane %v86_v60, %v3133_v44 }
  0x26   :  { %2948 = vset.pattern.permute.xlu1 %v2972_v4  ;;  %554 = vperm.xlu0 %2944, %v543_v13   ;;  %v214_v4 = vrot.slane %v30_v51, %v197_v48 }
  0x27   :  { %359 = vperm.xlu1 %2948, %v348_v14  }
  0x2a   :  { %1082 = vperm.xlu0 %2944, %v2854_v15   ;;  %v3169_v15 = vrot.slane %v218_v62, %v197_v48 }
  0x2b   :  { %569 = vperm.xlu1 %2948, %v546_v16   ;;  %v3172_v16 = vrot.slane %v94_v63, %v3133_v44 }
  0x2e   :  { %1072 = vperm.xlu0 %2944, %v2852_v17   ;;  %v3175_v17 = vrot.slane %v82_v0, %v3133_v44 }
  0x2f   :  { %559 = vperm.xlu1 %2948, %v544_v18   ;;  %v3178_v18 = vrot.slane %v90_v61, %v3133_v44 }
  0x32   :  { %1062 = vperm.xlu0 %2944, %v2850_v20  }
  0x33   :  { %549 = vperm.xlu1 %2948, %v542_v21   ;;  %v3181_v21 = vrot.slane %v226_v3, %v197_v48 }
  0x36   :  { %1589 = vperm.xlu0 %2944, %v2883_v22   ;;  %v3183_v22 = vrot.slane %v214_v4, %v197_v48 }
  0x37   :  { %1077 = vperm.xlu1 %2948, %v2853_v23   ;;  %v3185_v23 = vrot.slane %v222_v2, %v197_v48 }
  0x39   :  { %5019 = vst [vmem:[#allocation8_spill] sm:$0xff] %v3185_v23 }
  0x3a   :  { %1579 = vperm.xlu0 %2944, %v2881_v24  }
  0x3b   :  { %1067 = vperm.xlu1 %2948, %v2851_v25  }
  0x3e   :  { %2086 = vperm.xlu0 %2944, %v2910_v26  }
  0x3f   :  { %1594 = vperm.xlu1 %2948, %v2884_v27  }
  0x42   :  { %2096 = vperm.xlu0 %2944, %v2912_v28  }
  0x43   :  { %1584 = vperm.xlu1 %2948, %v2882_v29  }
  0x46   :  { %2106 = vperm.xlu0 %2944, %v2914_v30  }
  0x47   :  { %1574 = vperm.xlu1 %2948, %v2880_v31  }
  0x4a   :  { %2596 = vperm.xlu0 %2944, %v2585_v32  }
  0x4b   :  { %2091 = vperm.xlu1 %2948, %v2911_v33  }
  0x4e   :  { %2606 = vperm.xlu0 %2944, %v2587_v34  }
  0x4f   :  { %2101 = vperm.xlu1 %2948, %v2913_v35  }
  0x52   :  { %2737 = vperm.xlu0 %2944, %v2734_v36  }
  0x53   :  { %2591 = vperm.xlu1 %2948, %v2584_v37  }
  0x57   :  { %2601 = vperm.xlu1 %2948, %v2586_v38  }
  0x5b   :  { %2611 = vperm.xlu1 %2948, %v2588_v39  }
  0x80   :  { %v54_v13 = vpop.permute.xlu1 %53  ;;  %v193_v14 = vpop.permute.xlu0 %192 }
  0x81   :  { %v300_v20 = vmul.f32 %v3149_v5, %v193_v14  ;;  %v302_v24 = vmul.f32 %v3154_v7, %v193_v14  ;;  %v299_v25 = vmul.f32 %v3159_v9, %v193_v14  ;;  %v301_v26 = vmul.f32 %v3164_v11, %v193_v14 }
  0x82   :  { %v160_v27 = vmul.f32 %v3147_v1, %v54_v13  ;;  %v162_v28 = vmul.f32 %v3152_v6, %v54_v13  ;;  %v159_v29 = vmul.f32 %v3157_v8, %v54_v13  ;;  %v161_v30 = vmul.f32 %v3162_v10, %v54_v13 }
  0x83   :  { %v3195_v31 = vmul.f32 %v3169_v15, %v193_v14  ;;  %v3200_v33 = vmul.f32 %v3181_v21, %v193_v14  ;;  %v3203_v34 = vmul.f32 %v3183_v22, %v193_v14  ;;  %v3206_v35 = vmul.f32 %v3185_v23, %v193_v14 }
  0x84   :  { %v3197_v32 = vpop.permute.xlu0 %184  ;;  %v164_v36 = vmul.f32 %v3167_v12, %v54_v13  ;;  %v166_v39 = vmul.f32 %v3172_v16, %v54_v13  ;;  %v163_v40 = vmul.f32 %v3175_v17, %v54_v13  ;;  %v3214_v42 = vmul.f32 %v3178_v18, %v54_v13 }
  0x85   :  { %v189_v37 = vpop.permute.xlu1 %188  ;;  %v284_v38 = vmul.f32 %v3149_v5, %v3197_v32  ;;  %v286_v48 = vmul.f32 %v3154_v7, %v3197_v32  ;;  %v283_v49 = vmul.f32 %v3159_v9, %v3197_v32  ;;  %v285_v50 = vmul.f32 %v3164_v11, %v3197_v32 }
  0x86   :  { %v292_v43 = vmul.f32 %v3149_v5, %v189_v37  ;;  %v294_v45 = vmul.f32 %v3154_v7, %v189_v37  ;;  %v291_v46 = vmul.f32 %v3159_v9, %v189_v37  ;;  %v293_v47 = vmul.f32 %v3164_v11, %v189_v37 }
  0x87   :  { %v296_v51 = vmul.f32 %v3169_v15, %v189_v37  ;;  %v298_v53 = vmul.f32 %v3181_v21, %v189_v37  ;;  %v295_v54 = vmul.f32 %v3183_v22, %v189_v37  ;;  %v3232_v55 = vmul.f32 %v3185_v23, %v189_v37 }
  0x88   :  { %v3227_v52 = vadd.f32 %v292_v43, %v160_v27  ;;  %v3234_v57 = vadd.f32 %v294_v45, %v162_v28  ;;  %v3236_v58 = vadd.f32 %v291_v46, %v159_v29  ;;  %v3238_v59 = vadd.f32 %v293_v47, %v161_v30 }
  0x89   :  { %v59_v56 = vpop.permute.xlu0 %58  ;;  %v3240_v60 = vadd.f32 %v296_v51, %v164_v36  ;;  %v3258_v45 = vadd.f32 %v298_v53, %v166_v39  ;;  %v3260_v46 = vadd.f32 %v295_v54, %v163_v40 }
  0x8a   :  { %v3242_v61 = vpop.permute.xlu1 %48  ;;  %v168_v62 = vmul.f32 %v3147_v1, %v59_v56  ;;  %v170_v63 = vmul.f32 %v3152_v6, %v59_v56  ;;  %v167_v0 = vmul.f32 %v3157_v8, %v59_v56  ;;  %v169_v2 = vmul.f32 %v3162_v10, %v59_v56 }
  0x8b   :  { %v152_v3 = vmul.f32 %v3147_v1, %v3242_v61  ;;  %v154_v4 = vmul.f32 %v3152_v6, %v3242_v61  ;;  %v151_v13 = vmul.f32 %v3157_v8, %v3242_v61  ;;  %v153_v14 = vmul.f32 %v3162_v10, %v3242_v61 }
  0x8c   :  { %v340_v27 = vadd.f32 %v300_v20, %v168_v62  ;;  %v342_v28 = vadd.f32 %v302_v24, %v170_v63  ;;  %v339_v29 = vadd.f32 %v299_v25, %v167_v0  ;;  %v341_v30 = vadd.f32 %v301_v26, %v169_v2 }
  0x8d   :  { %v3256_v36 = vpop.permute.xlu0 %43  ;;  %v324_v37 = vadd.f32 %v284_v38, %v152_v3  ;;  %v326_v43 = vadd.f32 %v286_v48, %v154_v4  ;;  %v323_v51 = vadd.f32 %v283_v49, %v151_v13  ;;  %v325_v19 = vadd.f32 %v285_v50, %v153_v14 }
  0x8e   :  { %5020 = vst [vmem:[#allocation9_spill] sm:$0xff] %v3256_v36  ;;  %v3262_v47 = vpop.permute.xlu1 %374  ;;  %v144_v41 = vmul.f32 %v3147_v1, %v3256_v36  ;;  %v146_v20 = vmul.f32 %v3152_v6, %v3256_v36  ;;  %v143_v39 = vmul.f32 %v3157_v8, %v3256_v36  ;;  %v3276_v40 = vmul.f32 %v3162_v10, %v3256_v36 }
  0x8f   :  { %v410_v24 = vadd.f32 %v3262_v47, %v340_v27  ;;  %v412_v25 = vadd.f32 %v3262_v47, %v342_v28  ;;  %v409_v26 = vadd.f32 %v3262_v47, %v339_v29  ;;  %v411_v38 = vadd.f32 %v3262_v47, %v341_v30 }
  0x90   :  { %v3279_v48 = vmul.f32 %v3167_v12, %v59_v56  ;;  %v3282_v49 = vmul.f32 %v3172_v16, %v59_v56  ;;  %v3291_v3 = vmul.f32 %v3175_v17, %v59_v56  ;;  %v3294_v4 = vmul.f32 %v3178_v18, %v59_v56 }
  0x91   :  { %v3284_v50 = vpop.permute.xlu0 %38  ;;  %v450_v53 = vmul.f32 %v410_v24, %v410_v24  ;;  %v452_v54 = vmul.f32 %v412_v25, %v412_v25  ;;  %v449_v62 = vmul.f32 %v409_v26, %v409_v26  ;;  %v451_v63 = vmul.f32 %v411_v38, %v411_v38 }
  0x92   :  { %5021 = vst [vmem:[#allocation10_spill] sm:$0xff] %v3284_v50  ;;  %v136_v0 = vmul.f32 %v3147_v1, %v3284_v50  ;;  %v138_v2 = vmul.f32 %v3152_v6, %v3284_v50  ;;  %v3312_v56 = vmul.f32 %v3157_v8, %v3284_v50  ;;  %v3316_v30 = vmul.f32 %v3162_v10, %v3284_v50 }
  0x93   :  { %v3296_v13 = vpop.permute.xlu1 %180  ;;  %v3298_v14 = vmul.f32 %v450_v53, %v410_v24  ;;  %v3300_v27 = vmul.f32 %v452_v54, %v412_v25  ;;  %v3302_v28 = vmul.f32 %v449_v62, %v409_v26  ;;  %v3304_v29 = vmul.f32 %v451_v63, %v411_v38 }
  0x94   :  { %5022 = vst [vmem:[#allocation11_spill] sm:$0xff] %v3296_v13  ;;  %v276_v1 = vmul.f32 %v3149_v5, %v3296_v13  ;;  %v278_v6 = vmul.f32 %v3154_v7, %v3296_v13  ;;  %v275_v38 = vmul.f32 %v3159_v9, %v3296_v13  ;;  %v277_v53 = vmul.f32 %v3164_v11, %v3296_v13 }
  0x95   :  { %5023 = vst [vmem:[#allocation12_spill] sm:$0xff] %v3298_v14  ;;  %5024 = vst [vmem:[#allocation13_spill] sm:$0xff] %v3300_v27  ;;  %v3318_v24 = vpop.permute.xlu0 %364  ;;  %v4912_v25 = vmax.f32 %v3298_v14, 0.0  ;;  %v4914_v26 = vmax.f32 %v3300_v27, 0.0 }
  0x96   :  { %5025 = vst [vmem:[#allocation14_spill] sm:$0xff] %v3302_v28  ;;  %5026 = vst [vmem:[#allocation15_spill] sm:$0xff] %v3304_v29  ;;  %v394_v54 = vadd.f32 %v3318_v24, %v324_v37  ;;  %v396_v62 = vadd.f32 %v3318_v24, %v326_v43  ;;  %v393_v8 = vadd.f32 %v3318_v24, %v323_v51  ;;  %v5028_v43 = vmax.f32 %v3302_v28, 0.0 }
  0x97   :  { %5027 = vst [vmem:[#allocation16_spill] sm:$0xff] %v3318_v24  ;;  %v395_v63 = vadd.f32 %v3318_v24, %v325_v19  ;;  %610 = vmatprep.subr.mxu0 %v4912_v25  ;;  %705 = vmatprep.subr.mxu1 %v4914_v26  ;;  %v316_v10 = vadd.f32 %v276_v1, %v144_v41  ;;  %v5029_v19 = vmax.f32 %v3304_v29, 0.0 }
  0x98   :  { %v3336_v37 = vpop.permute.xlu1 %369  ;;  %611 = vmatpush1.msra.mxu0 %v5028_v43  ;;  %v434_v51 = vmul.f32 %v394_v54, %v394_v54  ;;  %v436_v25 = vmul.f32 %v396_v62, %v396_v62  ;;  %v433_v44 = vmul.f32 %v393_v8, %v393_v8  ;;  %v318_v29 = vadd.f32 %v278_v6, %v146_v20 }
  0x99   :  { %706 = vmatpush1.msra.mxu1 %v5029_v19  ;;  %v402_v41 = vadd.f32 %v3336_v37, %v3227_v52  ;;  %v404_v1 = vadd.f32 %v3336_v37, %v3234_v57  ;;  %v401_v26 = vadd.f32 %v3336_v37, %v3236_v58  ;;  %v403_v27 = vadd.f32 %v3336_v37, %v3238_v59 }
  0x9a   :  { %v3350_v28 = vmul.f32 %v434_v51, %v394_v54  ;;  %v3352_v43 = vmul.f32 %v436_v25, %v396_v62  ;;  %v435_v19 = vmul.f32 %v395_v63, %v395_v63  ;;  %v3356_v36 = vmul.f32 %v433_v44, %v393_v8 }
  0x9b   :  { %v442_v14 = vmul.f32 %v402_v41, %v402_v41  ;;  %v444_v50 = vmul.f32 %v404_v1, %v404_v1  ;;  %v441_v13 = vmul.f32 %v401_v26, %v401_v26  ;;  %v443_v24 = vmul.f32 %v403_v27, %v403_v27 }
  0x9c   :  { %v4962_v52 = vmax.f32 %v3350_v28, 0.0  ;;  %v4943_v57 = vmax.f32 %v3352_v43, 0.0  ;;  %v315_v58 = vadd.f32 %v275_v38, %v143_v39  ;;  %v3368_v6 = vmul.f32 %v435_v19, %v395_v63 }
  0x9d   :  { %v3358_v23 = vpop.permute.xlu1 %176  ;;  %v3360_v59 = vmul.f32 %v442_v14, %v402_v41  ;;  %v3362_v54 = vmul.f32 %v444_v50, %v404_v1  ;;  %v3364_v25 = vmul.f32 %v441_v13, %v401_v26  ;;  %v3366_v20 = vmul.f32 %v443_v24, %v403_v27 }
  0x9e   :  { %v317_v62 = vadd.f32 %v277_v53, %v3276_v40  ;;  %v268_v51 = vmul.f32 %v3149_v5, %v3358_v23  ;;  %v270_v44 = vmul.f32 %v3154_v7, %v3358_v23  ;;  %v267_v26 = vmul.f32 %v3159_v9, %v3358_v23  ;;  %v3383_v5 = vpop.permute.xlu0 %354 }
  0x9f   :  { %v4964_v39 = vmax.f32 %v3360_v59, 0.0  ;;  %v4949_v14 = vmax.f32 %v3362_v54, 0.0  ;;  %v4963_v50 = vmax.f32 %v3364_v25, 0.0  ;;  %v4946_v13 = vmax.f32 %v3366_v20, 0.0 }
  0xa0   :  { %v308_v27 = vadd.f32 %v268_v51, %v136_v0  ;;  %v310_v24 = vadd.f32 %v270_v44, %v138_v2  ;;  %v269_v40 = vmul.f32 %v3164_v11, %v3358_v23  ;;  %v4948_v7 = vmax.f32 %v3356_v36, 0.0 }
  0xa1   :  { %612 = vmatprep.subr.mxu0 %v4964_v39  ;;  %707 = vmatprep.subr.mxu1 %v4949_v14  ;;  %v344_v0 = vadd.f32 %v3195_v31, %v3279_v48  ;;  %v346_v2 = vadd.f32 %v3200_v33, %v3282_v49  ;;  %v343_v9 = vadd.f32 %v3203_v34, %v3291_v3  ;;  %v4929_v38 = vmax.f32 %v3368_v6, 0.0 }
  0xa2   :  { %v3396_v11 = vpop.permute.xlu1 %359  ;;  %613 = vmatpush1.msra.mxu0 %v4963_v50  ;;  %708 = vmatpush1.msra.mxu1 %v4946_v13  ;;  %v378_v53 = vadd.f32 %v3383_v5, %v308_v27  ;;  %v380_v31 = vadd.f32 %v3383_v5, %v310_v24  ;;  %v307_v48 = vadd.f32 %v267_v26, %v3312_v56 }
  0xa3   :  { %614 = vmatprep.subr.mxu0 %v4962_v52  ;;  %709 = vmatprep.subr.mxu1 %v4943_v57  ;;  %v386_v33 = vadd.f32 %v3396_v11, %v316_v10  ;;  %v388_v34 = vadd.f32 %v3396_v11, %v318_v29  ;;  %v385_v49 = vadd.f32 %v3396_v11, %v315_v58 }
  0xa4   :  { %615 = vmatpush1.msra.mxu0 %v4948_v7  ;;  %710 = vmatpush1.msra.mxu1 %v4929_v38  ;;  %v387_v3 = vadd.f32 %v3396_v11, %v317_v62  ;;  %v418_v56 = vmul.f32 %v378_v53, %v378_v53  ;;  %v420_v8 = vmul.f32 %v380_v31, %v380_v31 }
  0xa5   :  { %v426_v63 = vmul.f32 %v386_v33, %v386_v33  ;;  %v428_v41 = vmul.f32 %v388_v34, %v388_v34  ;;  %v425_v1 = vmul.f32 %v385_v49, %v385_v49  ;;  %v377_v10 = vadd.f32 %v3383_v5, %v307_v48 }
  0xa6   :  { %v427_v19 = vmul.f32 %v387_v3, %v387_v3  ;;  %v3419_v29 = vmul.f32 %v418_v56, %v378_v53  ;;  %v3421_v58 = vmul.f32 %v420_v8, %v380_v31  ;;  %v309_v51 = vadd.f32 %v269_v40, %v3316_v30 }
  0xa7   :  { %v3424_v44 = vmul.f32 %v426_v63, %v386_v33  ;;  %v3426_v27 = vmul.f32 %v428_v41, %v388_v34  ;;  %v3428_v62 = vmul.f32 %v425_v1, %v385_v49  ;;  %v417_v24 = vmul.f32 %v377_v10, %v377_v10 }
  0xa8   :  { %v3430_v26 = vmul.f32 %v427_v19, %v387_v3  ;;  %v4941_v38 = vmax.f32 %v3419_v29, 0.0  ;;  %v379_v48 = vadd.f32 %v3383_v5, %v309_v51  ;;  %v337_v53 = vadd.f32 %v3232_v55, %v3214_v42 }
  0xa9   :  { %v4944_v31 = vmax.f32 %v3424_v44, 0.0  ;;  %v4940_v30 = vmax.f32 %v3426_v27, 0.0  ;;  %v4942_v40 = vmax.f32 %v3428_v62, 0.0  ;;  %v3439_v33 = vmul.f32 %v417_v24, %v377_v10 }
  0xaa   :  { %v4937_v34 = vmax.f32 %v3430_v26, 0.0  ;;  %v419_v49 = vmul.f32 %v379_v48, %v379_v48  ;;  %v414_v3 = vadd.f32 %v3262_v47, %v344_v0  ;;  %v416_v56 = vadd.f32 %v3262_v47, %v346_v2 }
  0xab   :  { %616 = vmatprep.subr.mxu0 %v4944_v31  ;;  %711 = vmatprep.subr.mxu1 %v4940_v30  ;;  %v4934_v42 = vmax.f32 %v3421_v58, 0.0  ;;  %v413_v55 = vadd.f32 %v3262_v47, %v343_v9  ;;  %v345_v8 = vadd.f32 %v3206_v35, %v3294_v4  ;;  %v406_v63 = vadd.f32 %v3336_v37, %v3240_v60  ;;  %v3464_v9 = vld [vmem:[%s4904_s3] sm:$0xff] }
  0xac   :  { %617 = vmatpush1.msra.mxu0 %v4942_v40  ;;  %712 = vmatpush1.msra.mxu1 %v4937_v34  ;;  %v4938_v0 = vmax.f32 %v3439_v33, 0.0  ;;  %v3459_v2 = vmul.f32 %v419_v49, %v379_v48  ;;  %v454_v41 = vmul.f32 %v414_v3, %v414_v3  ;;  %v456_v35 = vmul.f32 %v416_v56, %v416_v56  ;;  %v5034_v34 = vld [vmem:[#allocation8_spill] sm:$0xff]  ;;  %v5037_v40 = vld [vmem:[#allocation11_spill] sm:$0xff] }
  0xad   :  { %618 = vmatprep.subr.mxu0 %v4941_v38  ;;  %713 = vmatprep.subr.mxu1 %v4934_v42  ;;  %v453_v60 = vmul.f32 %v413_v55, %v413_v55  ;;  %v415_v4 = vadd.f32 %v3262_v47, %v345_v8  ;;  %v446_v1 = vmul.f32 %v406_v63, %v406_v63 }
  0xae   :  { %619 = vmatpush1.msra.mxu0 %v4938_v0  ;;  %v4930_v10 = vmax.f32 %v3459_v2, 0.0  ;;  %v3474_v19 = vmul.f32 %v454_v41, %v414_v3  ;;  %v3476_v51 = vmul.f32 %v456_v35, %v416_v56  ;;  %v408_v24 = vadd.f32 %v3336_v37, %v3258_v45 }
  0xaf   :  { %2825 = vmatmul.mubr.msk.f32.vlgmr.msra.gmra.mxu0 %vm572_vm0, %v3464_v9  ;;  %v3482_v48 = vmul.f32 %v453_v60, %v413_v55  ;;  %v455_v49 = vmul.f32 %v415_v4, %v415_v4  ;;  %v3484_v47 = vmul.f32 %v446_v1, %v406_v63  ;;  %v405_v8 = vadd.f32 %v3336_v37, %v3260_v46  ;;  %v3502_v60 = vld [vmem:[%s4904_s3 + $0x8] sm:$0xff] }
  0xb0   :  { %714 = vmatpush1.msra.mxu1 %v4930_v10  ;;  %v4932_v3 = vmax.f32 %v3474_v19, 0.0  ;;  %v4931_v56 = vmax.f32 %v3476_v51, 0.0  ;;  %v448_v41 = vmul.f32 %v408_v24, %v408_v24  ;;  %v5030_v45 = vmov 0.0  }
  0xb1   :  { %658 = vmatprep.mubr.f32.mxu0 %v5030_v45  ;;  %v407_v35 = vadd.f32 %v3336_v37, %v337_v53  ;;  %2830 = vmatmul.mubr.msk.f32.vlgmr.msra.gmra.mxu1 %vm572_vm0, %v3464_v9  ;;  %v4933_v55 = vmax.f32 %v3482_v48, 0.0  ;;  %v3497_v63 = vmul.f32 %v455_v49, %v415_v4  ;;  %v445_v46 = vmul.f32 %v405_v8, %v405_v8 }
  0xb2   :  { %800 = vmatprep.subr.mxu0 %v4932_v3  ;;  %895 = vmatprep.subr.mxu1 %v4931_v56  ;;  %v4935_v37 = vmax.f32 %v3484_v47, 0.0  ;;  %v3509_v53 = vmul.f32 %v448_v41, %v408_v24  ;;  %v156_v4 = vmul.f32 %v3167_v12, %v3242_v61  ;;  %v288_v56 = vmul.f32 %v3169_v15, %v3197_v32 }
  0xb3   :  { %v447_v1 = vmul.f32 %v407_v35, %v407_v35  ;;  %801 = vmatpush1.msra.mxu0 %v4933_v55  ;;  %v4936_v49 = vmax.f32 %v3497_v63, 0.0  ;;  %753 = vmatprep.mubr.f32.mxu1 %v5030_v45  ;;  %v3517_v10 = vmul.f32 %v445_v46, %v405_v8  ;;  %v158_v24 = vmul.f32 %v3172_v16, %v3242_v61 }
  0xb4   :  { %5031 = vst [vmem:[#allocation17_spill] sm:$0xff] %v3509_v53  ;;  %802 = vmatprep.subr.mxu0 %v4935_v37  ;;  %v4939_v41 = vmax.f32 %v3509_v53, 0.0  ;;  %2826 = vmatmul.mubr.msk.f32.gmra.mxu0 %vm572_vm0, %v3502_v60  ;;  %v290_v8 = vmul.f32 %v3181_v21, %v3197_v32  ;;  %v155_v46 = vmul.f32 %v3175_v17, %v3242_v61 }
  0xb5   :  { %5032 = vst [vmem:[#allocation18_spill] sm:$0xff] %v3517_v10  ;;  %v3526_v3 = vmul.f32 %v447_v1, %v407_v35  ;;  %896 = vmatpush1.msra.mxu1 %v4936_v49  ;;  %v4945_v55 = vmax.f32 %v3517_v10, 0.0  ;;  %v328_v42 = vadd.f32 %v288_v56, %v156_v4  ;;  %v287_v37 = vmul.f32 %v3183_v22, %v3197_v32  ;;  %v5035_v4 = vld [vmem:[#allocation9_spill] sm:$0xff] }
  0xb6   :  { %v157_v35 = vmul.f32 %v3178_v18, %v3242_v61  ;;  %664 = vmatprep.mubr.f32.mxu0 %v5030_v45  ;;  %897 = vmatprep.subr.mxu1 %v4939_v41  ;;  %v330_v49 = vadd.f32 %v290_v8, %v158_v24  ;;  %v289_v56 = vmul.f32 %v5034_v34, %v3197_v32  ;;  %v3554_v61 = vld [vmem:[%s4904_s3 + $0x10] sm:$0xff]  ;;  %v5036_v41 = vld [vmem:[#allocation16_spill] sm:$0xff] }
  0xb7   :  { %5033 = vst [vmem:[#allocation19_spill] sm:$0xff] %v3526_v3  ;;  %v4947_v1 = vmax.f32 %v3526_v3, 0.0  ;;  %2831 = vmatmul.mubr.msk.f32.gmra.mxu1 %vm572_vm0, %v3502_v60  ;;  %v148_v0 = vmul.f32 %v3167_v12, %v5035_v4  ;;  %803 = vmatpush1.msra.mxu0 %v4945_v55  ;;  %v398_v30 = vadd.f32 %v5036_v41, %v328_v42  ;;  %v5051_v3 = vld [vmem:[#allocation12_spill] sm:$0xff] }
  0xb8   :  { %v327_v38 = vadd.f32 %v287_v37, %v155_v46  ;;  %v280_v24 = vmul.f32 %v3169_v15, %v5037_v40  ;;  %v150_v32 = vmul.f32 %v3172_v16, %v5035_v4  ;;  %v400_v8 = vadd.f32 %v5036_v41, %v330_v49  ;;  %759 = vmatprep.mubr.f32.mxu1 %v5030_v45 }
  0xb9   :  { %898 = vmatpush1.msra.mxu1 %v4947_v1  ;;  %v329_v57 = vadd.f32 %v289_v56, %v157_v35  ;;  %v282_v31 = vmul.f32 %v3181_v21, %v5037_v40  ;;  %v438_v55 = vmul.f32 %v398_v30, %v398_v30  ;;  %v147_v46 = vmul.f32 %v3175_v17, %v5035_v4 }
  0xba   :  { %v397_v42 = vadd.f32 %v5036_v41, %v327_v38  ;;  %v320_v37 = vadd.f32 %v280_v24, %v148_v0  ;;  %2827 = vmatmul.mubr.msk.f32.gmra.mxu0 %vm572_vm0, %v3554_v61  ;;  %v440_v13 = vmul.f32 %v400_v8, %v400_v8  ;;  %v279_v35 = vmul.f32 %v3183_v22, %v5037_v40  ;;  %v3582_v38 = vld [vmem:[%s4904_s3 + $0x18] sm:$0xff] }
  0xbb   :  { %v399_v1 = vadd.f32 %v5036_v41, %v329_v57  ;;  %v322_v49 = vadd.f32 %v282_v31, %v150_v32  ;;  %2832 = vmatmul.mubr.msk.f32.gmra.mxu1 %vm572_vm0, %v3554_v61  ;;  %v3584_v0 = vmul.f32 %v438_v55, %v398_v30  ;;  %v149_v57 = vmul.f32 %v3178_v18, %v5035_v4 }
  0xbc   :  { %v437_v56 = vmul.f32 %v397_v42, %v397_v42  ;;  %v390_v24 = vadd.f32 %v3396_v11, %v320_v37  ;;  %670 = vmatprep.mubr.f32.mxu0 %v5030_v45  ;;  %v3590_v31 = vmul.f32 %v440_v13, %v400_v8  ;;  %v319_v7 = vadd.f32 %v279_v35, %v147_v46  ;;  %v5043_v35 = vld [vmem:[#allocation10_spill] sm:$0xff] }
  0xbd   :  { %5038 = vst [vmem:[#allocation8_spill] sm:$0xff] %v3584_v0  ;;  %v439_v41 = vmul.f32 %v399_v1, %v399_v1  ;;  %v392_v32 = vadd.f32 %v3396_v11, %v322_v49  ;;  %765 = vmatprep.mubr.f32.mxu1 %v5030_v45  ;;  %v4961_v14 = vmax.f32 %v3584_v0, 0.0  ;;  %v281_v37 = vmul.f32 %v5034_v34, %v5037_v40 }
  0xbe   :  { %5039 = vst [vmem:[#allocation9_spill] sm:$0xff] %v3590_v31  ;;  %v3595_v30 = vmul.f32 %v437_v56, %v397_v42  ;;  %v430_v55 = vmul.f32 %v390_v24, %v390_v24  ;;  %2828 = vmatmul.mubr.msk.f32.gmra.mxu0 %vm572_vm0, %v3582_v38  ;;  %v4950_v13 = vmax.f32 %v3590_v31, 0.0  ;;  %v389_v46 = vadd.f32 %v3396_v11, %v319_v7  ;;  %v3619_v7 = vld [vmem:[%s4904_s3 + $0x20] sm:$0xff] }
  0xbf   :  { %v3602_v4 = vmul.f32 %v439_v41, %v399_v1  ;;  %v432_v8 = vmul.f32 %v392_v32, %v392_v32  ;;  %2833 = vmatmul.mubr.msk.f32.gmra.mxu1 %vm572_vm0, %v3582_v38  ;;  %676 = vmatprep.mubr.f32.mxu0 %v5030_v45  ;;  %v321_v49 = vadd.f32 %v281_v37, %v149_v57 }
  0xc0   :  { %5040 = vst [vmem:[#allocation16_spill] sm:$0xff] %v3595_v30  ;;  %804 = vmatprep.subr.mxu0 %v4961_v14  ;;  %v4960_v40 = vmax.f32 %v3595_v30, 0.0  ;;  %v3611_v42 = vmul.f32 %v430_v55, %v390_v24  ;;  %v140_v1 = vmul.f32 %v3167_v12, %v5043_v35  ;;  %771 = vmatprep.mubr.f32.mxu1 %v5030_v45 }
  0xc1   :  { %5041 = vst [vmem:[#allocation11_spill] sm:$0xff] %v3602_v4  ;;  %899 = vmatprep.subr.mxu1 %v4950_v13  ;;  %v4958_v56 = vmax.f32 %v3602_v4, 0.0  ;;  %v3624_v41 = vmul.f32 %v432_v8, %v392_v32  ;;  %v429_v24 = vmul.f32 %v389_v46, %v389_v46  ;;  %v272_v57 = vmul.f32 %v3169_v15, %v3358_v23 }
  0xc2   :  { %5042 = vst [vmem:[#allocation20_spill] sm:$0xff] %v3611_v42  ;;  %805 = vmatpush1.msra.mxu0 %v4960_v40  ;;  %v4959_v12 = vmax.f32 %v3611_v42, 0.0  ;;  %v391_v55 = vadd.f32 %v3396_v11, %v321_v49  ;;  %v142_v37 = vmul.f32 %v3172_v16, %v5043_v35  ;;  %v274_v13 = vmul.f32 %v3181_v21, %v3358_v23 }
  0xc3   :  { %5044 = vst [vmem:[#allocation10_spill] sm:$0xff] %v3624_v41  ;;  %900 = vmatpush1.msra.mxu1 %v4958_v56  ;;  %v4956_v32 = vmax.f32 %v3624_v41, 0.0  ;;  %v3639_v8 = vmul.f32 %v429_v24, %v389_v46  ;;  %v312_v15 = vadd.f32 %v272_v57, %v140_v1  ;;  %2829 = vmatmul.mubr.msk.f32.gmra.mxu0 %vm572_vm0, %v3619_v7 }
  0xc4   :  { %806 = vmatprep.subr.mxu0 %v4959_v12  ;;  %v431_v11 = vmul.f32 %v391_v55, %v391_v55  ;;  %v314_v49 = vadd.f32 %v274_v13, %v142_v37  ;;  %v139_v16 = vmul.f32 %v3175_v17, %v5043_v35  ;;  %v271_v21 = vmul.f32 %v3183_v22, %v3358_v23 }
  0xc5   :  { %5045 = vst [vmem:[#allocation21_spill] sm:$0xff] %v3639_v8  ;;  %901 = vmatprep.subr.mxu1 %v4956_v32  ;;  %v4957_v46 = vmax.f32 %v3639_v8, 0.0  ;;  %v382_v1 = vadd.f32 %v3383_v5, %v312_v15  ;;  %v141_v24 = vmul.f32 %v3178_v18, %v5043_v35  ;;  %v273_v57 = vmul.f32 %v5034_v34, %v3358_v23 }
  0xc6   :  { %2834 = vmatmul.mubr.msk.f32.gmra.mxu1 %vm572_vm0, %v3619_v7  ;;  %v3659_v17 = vmul.f32 %v431_v11, %v391_v55  ;;  %v384_v22 = vadd.f32 %v3383_v5, %v314_v49  ;;  %v311_v13 = vadd.f32 %v271_v21, %v139_v16  ;;  %842 = vmatprep.mubr.f32.mxu0 %v5030_v45 }
  0xc7   :  { %937 = vmatprep.mubr.f32.mxu1 %v5030_v45  ;;  %807 = vmatpush1.msra.mxu0 %v4957_v46  ;;  %v422_v37 = vmul.f32 %v382_v1, %v382_v1  ;;  %v313_v18 = vadd.f32 %v273_v57, %v141_v24 }
  0xc8   :  { %5046 = vst [vmem:[#allocation22_spill] sm:$0xff] %v3659_v17  ;;  %v4954_v35 = vmax.f32 %v3659_v17, 0.0  ;;  %v424_v23 = vmul.f32 %v384_v22, %v384_v22  ;;  %v381_v34 = vadd.f32 %v3383_v5, %v311_v13 }
  0xc9   :  { %v3668_v15 = vmul.f32 %v422_v37, %v382_v1  ;;  %v383_v55 = vadd.f32 %v3383_v5, %v313_v18 }
  0xca   :  { %902 = vmatpush1.msra.mxu1 %v4954_v35  ;;  %v3673_v11 = vmul.f32 %v424_v23, %v384_v22  ;;  %v421_v49 = vmul.f32 %v381_v34, %v381_v34 }
  0xcb   :  { %5047 = vst [vmem:[#allocation23_spill] sm:$0xff] %v3668_v15  ;;  %v4955_v16 = vmax.f32 %v3668_v15, 0.0  ;;  %v423_v21 = vmul.f32 %v383_v55, %v383_v55 }
  0xcc   :  { %5048 = vst [vmem:[#allocation24_spill] sm:$0xff] %v3673_v11  ;;  %v4952_v24 = vmax.f32 %v3673_v11, 0.0  ;;  %v3677_v57 = vmul.f32 %v421_v49, %v381_v34 }
  0xcd   :  { %808 = vmatprep.subr.mxu0 %v4955_v16  ;;  %v3681_v1 = vmul.f32 %v423_v21, %v383_v55 }
  0xce   :  { %5049 = vst [vmem:[#allocation25_spill] sm:$0xff] %v3677_v57  ;;  %903 = vmatprep.subr.mxu1 %v4952_v24  ;;  %v4953_v5 = vmax.f32 %v3677_v57, 0.0  ;;  %v3725_v24 = vpop.permute.xlu0 %564 }
  0xcf   :  { %5050 = vst [vmem:[#allocation26_spill] sm:$0xff] %v3681_v1  ;;  %v4951_v22 = vmax.f32 %v3681_v1, 0.0 }
  0xd0   :  { %809 = vmatpush1.msra.mxu0 %v4953_v5 }
  0xd1   :  { %904 = vmatpush1.msra.mxu1 %v4951_v22  ;;  %2835 = vmatmul.mubr.msk.f32.vlgmr.msra.gmra.mxu0 %vm572_vm0, %v3464_v9 }
  0xd2   :  { %2840 = vmatmul.mubr.msk.f32.vlgmr.msra.gmra.mxu1 %vm572_vm0, %v3464_v9  ;;  %848 = vmatprep.mubr.f32.mxu0 %v5030_v45  ;;  %v3729_v12 = vpop.permute.xlu0 %554 }
  0xd3   :  { %943 = vmatprep.mubr.f32.mxu1 %v5030_v45 }
  0xd5   :  { %2836 = vmatmul.mubr.msk.f32.gmra.mxu0 %vm572_vm0, %v3502_v60 }
  0xd6   :  { %2841 = vmatmul.mubr.msk.f32.gmra.mxu1 %vm572_vm0, %v3502_v60  ;;  %854 = vmatprep.mubr.f32.mxu0 %v5030_v45 }
  0xd7   :  { %949 = vmatprep.mubr.f32.mxu1 %v5030_v45 }
  0xd9   :  { %2837 = vmatmul.mubr.msk.f32.gmra.mxu0 %vm572_vm0, %v3554_v61 }
  0xda   :  { %2842 = vmatmul.mubr.msk.f32.gmra.mxu1 %vm572_vm0, %v3554_v61  ;;  %860 = vmatprep.mubr.f32.mxu0 %v5030_v45 }
  0xdb   :  { %955 = vmatprep.mubr.f32.mxu1 %v5030_v45 }
  0xdd   :  { %2838 = vmatmul.mubr.msk.f32.gmra.mxu0 %vm572_vm0, %v3582_v38 }
  0xde   :  { %2843 = vmatmul.mubr.msk.f32.gmra.mxu1 %vm572_vm0, %v3582_v38  ;;  %866 = vmatprep.mubr.f32.mxu0 %v5030_v45  ;;  %v3721_v38 = vpop.permute.xlu1 %569 }
  0xdf   :  { %961 = vmatprep.mubr.f32.mxu1 %v5030_v45 }
  0xe1   :  { %2839 = vmatmul.mubr.msk.f32.gmra.mxu0 %vm572_vm0, %v3619_v7 }
  0xe2   :  { %2844 = vmatmul.mubr.msk.f32.gmra.mxu1 %vm572_vm0, %v3619_v7  ;;  %1164 = vmatprep.mubr.f32.mxu0 %v5030_v45  ;;  %v3723_v22 = vpop.permute.xlu1 %559 }
  0xe3   :  { %1259 = vmatprep.mubr.f32.mxu1 %v5030_v45 }
  0xe6   :  { %v3727_v46 = vpop.permute.xlu1 %549 }
 0x16f   :  { %v654_v9 = vpop.f32.mrf.mxu0 }
 0x170   :  { %v3732_v40 = vadd.f32 %v654_v9, %v3727_v46 }
 0x171   :  { %v749_v60 = vpop.f32.mrf.mxu1  ;;  %v656_v61 = vpop.f32.mrf.mxu0 }
 0x172   :  { %v3735_v14 = vadd.f32 %v749_v60, %v3727_v46  ;;  %v3740_v39 = vadd.f32 %v656_v61, %v3727_v46 }
 0x173   :  { %v751_v13 = vpop.f32.mrf.mxu1 }
 0x174   :  { %v660_v37 = vpop.f32.mrf.mxu0  ;;  %v3743_v1 = vadd.f32 %v751_v13, %v3727_v46 }
 0x175   :  { %v661_v11 = vadd.f32 %v660_v37, %v3729_v12 }
 0x176   :  { %v662_v23 = vpop.f32.mrf.mxu0 }
 0x177   :  { %v755_v18 = vpop.f32.mrf.mxu1  ;;  %v663_v61 = vadd.f32 %v662_v23, %v3729_v12 }
 0x179   :  { %v757_v34 = vpop.f32.mrf.mxu1 }
 0x17a   :  { %v666_v55 = vpop.f32.mrf.mxu0 }
 0x17b   :  { %v761_v49 = vpop.f32.mrf.mxu1  ;;  %v667_v41 = vadd.f32 %v666_v55, %v3723_v22  ;;  %v5052_v55 = vmax.f32 %v5051_v3, 0.0 }
 0x17c   :  { %v668_v21 = vpop.f32.mrf.mxu0 }
 0x17d   :  { %v763_v7 = vpop.f32.mrf.mxu1  ;;  %v669_v15 = vadd.f32 %v668_v21, %v3723_v22 }
 0x17e   :  { %v672_v5 = vpop.f32.mrf.mxu0 }
 0x17f   :  { %v767_v35 = vpop.f32.mrf.mxu1  ;;  %v673_v57 = vadd.f32 %v672_v5, %v3725_v24  ;;  %v764_v5 = vadd.f32 %v763_v7, %v3723_v22  ;;  %v985_v30 = vmax.f32 %v669_v15, 0.0  ;;  %v984_v7 = vmax.f32 %v667_v41, 0.0  ;;  %v5056_v15 = vld [vmem:[#allocation13_spill] sm:$0xff] }
 0x180   :  { %v674_v16 = vpop.f32.mrf.mxu0  ;;  %v768_v13 = vadd.f32 %v767_v35, %v3725_v24  ;;  %v756_v35 = vadd.f32 %v755_v18, %v3729_v12  ;;  %v5058_v41 = vmax.f32 %v3364_v25, 0.0  ;;  %v968_v25 = vmax.f32 %v3732_v40, 0.0 }
 0x181   :  { %v769_v32 = vpop.f32.mrf.mxu1  ;;  %v675_v52 = vadd.f32 %v674_v16, %v3725_v24  ;;  %v992_v31 = vmax.f32 %v673_v57, 0.0  ;;  %v987_v10 = vmax.f32 %v764_v5, 0.0  ;;  %v5055_v57 = vmax.f32 %v3360_v59, 0.0 }
 0x182   :  { %v770_v60 = vadd.f32 %v769_v32, %v3725_v24  ;;  %v758_v32 = vadd.f32 %v757_v34, %v3729_v12  ;;  %v977_v34 = vmax.f32 %v663_v61, 0.0  ;;  %v969_v59 = vmax.f32 %v3740_v39, 0.0 }
 0x183   :  { %v678_v56 = vpop.f32.mrf.mxu0  ;;  %v993_v4 = vmax.f32 %v675_v52, 0.0  ;;  %v994_v52 = vmax.f32 %v768_v13, 0.0  ;;  %v5061_v13 = vmax.f32 %v3350_v28, 0.0  ;;  %v5064_v39 = vmax.f32 %v3366_v20, 0.0 }
 0x184   :  { %v679_v50 = vadd.f32 %v678_v56, %v3721_v38  ;;  %v995_v23 = vmax.f32 %v770_v60, 0.0  ;;  %v5057_v60 = vmax.f32 %v5056_v15, 0.0  ;;  %v5066_v40 = vmax.f32 %v3352_v43, 0.0 }
 0x185   :  { %v680_v9 = vpop.f32.mrf.mxu0  ;;  %v3788_v5 = vadd.f32 %v985_v30, %v5061_v13  ;;  %v3803_v28 = vadd.f32 %v994_v52, %v5064_v39  ;;  %v5065_v30 = vmax.f32 %v3424_v44, 0.0  ;;  %v5067_v20 = vmax.f32 %v3428_v62, 0.0 }
 0x186   :  { %v773_v17 = vpop.f32.mrf.mxu1  ;;  %v681_v56 = vadd.f32 %v680_v9, %v3721_v38  ;;  %v1000_v8 = vmax.f32 %v679_v50, 0.0  ;;  %v5069_v43 = vmax.f32 %v3419_v29, 0.0  ;;  %v5072_v52 = vmax.f32 %v3430_v26, 0.0 }
 0x187   :  { %v774_v16 = vadd.f32 %v773_v17, %v3721_v38  ;;  %v762_v17 = vadd.f32 %v761_v49, %v3723_v22  ;;  %v3769_v49 = vadd.f32 %v993_v4, %v5055_v57  ;;  %v979_v4 = vmax.f32 %v758_v32, 0.0 }
 0x188   :  { %v775_v37 = vpop.f32.mrf.mxu1  ;;  %v1001_v42 = vmax.f32 %v681_v56, 0.0  ;;  %v5053_v56 = vld [vmem:[#allocation14_spill] sm:$0xff]  ;;  %v3810_v32 = vadd.f32 %v977_v34, %v5065_v30  ;;  %v5073_v34 = vmax.f32 %v3421_v58, 0.0  ;;  %v5074_v26 = vmax.f32 %v3459_v2, 0.0 }
 0x189   :  { %v776_v21 = vadd.f32 %v775_v37, %v3721_v38  ;;  %v1002_v9 = vmax.f32 %v774_v16, 0.0  ;;  %v5054_v53 = vmax.f32 %v5053_v56, 0.0  ;;  %v986_v18 = vmax.f32 %v762_v17, 0.0  ;;  %v3876_v2 = vld [vmem:[%s4904_s3 + $0x30] sm:$0xff] }
 0x18a   :  { %v3760_v0 = vadd.f32 %v1001_v42, %v5052_v55  ;;  %v976_v42 = vmax.f32 %v661_v11, 0.0  ;;  %v3778_v16 = vadd.f32 %v992_v31, %v5058_v41  ;;  %v5062_v11 = vmax.f32 %v3362_v54, 0.0 }
 0x18b   :  { %v1003_v50 = vmax.f32 %v776_v21, 0.0  ;;  %v3765_v37 = vadd.f32 %v1000_v8, %v5054_v53  ;;  %v5059_v53 = vld [vmem:[#allocation15_spill] sm:$0xff]  ;;  %v978_v31 = vmax.f32 %v756_v35, 0.0  ;;  %v5063_v17 = vmax.f32 %v3356_v36, 0.0 }
 0x18c   :  { %1122 = vmatprep.subr.mxu0 %v3760_v0  ;;  %v5060_v8 = vmax.f32 %v5059_v53, 0.0  ;;  %v3792_v21 = vadd.f32 %v995_v23, %v5062_v11  ;;  %v971_v54 = vmax.f32 %v3743_v1, 0.0  ;;  %v3814_v23 = vadd.f32 %v987_v10, %v5066_v40 }
 0x18d   :  { %v3773_v3 = vadd.f32 %v1003_v50, %v5057_v60  ;;  %1123 = vmatpush1.msra.mxu0 %v3765_v37  ;;  %v970_v36 = vmax.f32 %v3735_v14, 0.0  ;;  %v3821_v55 = vadd.f32 %v976_v42, %v5067_v20  ;;  %v5068_v1 = vmax.f32 %v3368_v6, 0.0 }
 0x18e   :  { %v3782_v61 = vadd.f32 %v1002_v9, %v5060_v8  ;;  %1124 = vmatprep.subr.mxu0 %v3769_v49  ;;  %v3799_v9 = vadd.f32 %v984_v7, %v5063_v17  ;;  %v3831_v10 = vadd.f32 %v969_v59, %v5069_v43  ;;  %v5070_v35 = vmax.f32 %v3426_v27, 0.0  ;;  %v3852_v27 = vld [vmem:[%s4904_s3 + $0x28] sm:$0xff]  ;;  %v3887_v59 = vld [vmem:[%s4904_s3 + $0x38] sm:$0xff] }
 0x18f   :  { %1217 = vmatprep.subr.mxu1 %v3773_v3  ;;  %1125 = vmatpush1.msra.mxu0 %v3778_v16  ;;  %v3825_v50 = vadd.f32 %v986_v18, %v5068_v1  ;;  %v5071_v6 = vmax.f32 %v3439_v33, 0.0  ;;  %v3845_v56 = vadd.f32 %v978_v31, %v5072_v52  ;;  %v3856_v57 = vadd.f32 %v971_v54, %v5073_v34  ;;  %v3898_v31 = vld [vmem:[%s4904_s3 + $0x40] sm:$0xff] }
 0x190   :  { %1218 = vmatpush1.msra.mxu1 %v3782_v61  ;;  %1126 = vmatprep.subr.mxu0 %v3788_v5  ;;  %v3835_v14 = vadd.f32 %v979_v4, %v5070_v35  ;;  %v3862_v15 = vadd.f32 %v970_v36, %v5074_v26 }
 0x191   :  { %1219 = vmatprep.subr.mxu1 %v3792_v21  ;;  %v844_v44 = vpop.f32.mrf.mxu0  ;;  %1127 = vmatpush1.msra.mxu0 %v3799_v9  ;;  %v3841_v7 = vadd.f32 %v968_v25, %v5071_v6 }
 0x192   :  { %1220 = vmatpush1.msra.mxu1 %v3803_v28  ;;  %v939_v62 = vpop.f32.mrf.mxu1  ;;  %1128 = vmatprep.subr.mxu0 %v3810_v32  ;;  %5075 = vst [vmem:[#allocation12_spill] sm:$0xff] %v3862_v15  ;;  %v3903_v39 = vadd.f32 %v844_v44, %v3727_v46 }
 0x193   :  { %1221 = vmatprep.subr.mxu1 %v3814_v23  ;;  %v846_v29 = vpop.f32.mrf.mxu0  ;;  %1129 = vmatpush1.msra.mxu0 %v3821_v55  ;;  %v3906_v54 = vadd.f32 %v939_v62, %v3727_v46 }
 0x194   :  { %1222 = vmatpush1.msra.mxu1 %v3825_v50  ;;  %v941_v33 = vpop.f32.mrf.mxu1  ;;  %1130 = vmatprep.subr.mxu0 %v3831_v10  ;;  %v3910_v40 = vadd.f32 %v846_v29, %v3727_v46 }
 0x195   :  { %1223 = vmatprep.subr.mxu1 %v3835_v14  ;;  %v850_v60 = vpop.f32.mrf.mxu0  ;;  %1131 = vmatpush1.msra.mxu0 %v3841_v7  ;;  %v3913_v36 = vadd.f32 %v941_v33, %v3727_v46  ;;  %v3929_v46 = vld [vmem:[%s4904_s3 + $0x48] sm:$0xff] }
 0x196   :  { %1224 = vmatpush1.msra.mxu1 %v3845_v56  ;;  %v3866_v42 = vpop.f32.mrf.mxu1  ;;  %2855 = vmatmul.mubr.msk.f32.vlgmr.msra.gmra.mxu0 %vm572_vm0, %v3852_v27  ;;  %v3920_v44 = vadd.f32 %v850_v60, %v3729_v12 }
 0x197   :  { %1225 = vmatprep.subr.mxu1 %v3856_v57  ;;  %v852_v58 = vpop.f32.mrf.mxu0  ;;  %1170 = vmatprep.mubr.f32.mxu0 %v5030_v45 }
 0x198   :  { %1226 = vmatpush1.msra.mxu1 %v3862_v15  ;;  %v947_v18 = vpop.f32.mrf.mxu1  ;;  %v853_v29 = vadd.f32 %v852_v58, %v3729_v12 }
 0x199   :  { %2860 = vmatmul.mubr.msk.f32.vlgmr.msra.gmra.mxu1 %vm572_vm0, %v3852_v27  ;;  %v856_v41 = vpop.f32.mrf.mxu0 }
 0x19a   :  { %1265 = vmatprep.mubr.f32.mxu1 %v5030_v45  ;;  %v951_v53 = vpop.f32.mrf.mxu1  ;;  %2856 = vmatmul.mubr.msk.f32.gmra.mxu0 %vm572_vm0, %v3876_v2 }
 0x19b   :  { %v858_v8 = vpop.f32.mrf.mxu0  ;;  %1176 = vmatprep.mubr.f32.mxu0 %v5030_v45  ;;  %v952_v58 = vadd.f32 %v951_v53, %v3723_v22 }
 0x19c   :  { %v953_v4 = vpop.f32.mrf.mxu1  ;;  %v859_v34 = vadd.f32 %v858_v8, %v3723_v22 }
 0x19d   :  { %2861 = vmatmul.mubr.msk.f32.gmra.mxu1 %vm572_vm0, %v3876_v2  ;;  %v862_v13 = vpop.f32.mrf.mxu0 }
 0x19e   :  { %1271 = vmatprep.mubr.f32.mxu1 %v5030_v45  ;;  %v957_v11 = vpop.f32.mrf.mxu1  ;;  %2857 = vmatmul.mubr.msk.f32.gmra.mxu0 %vm572_vm0, %v3887_v59  ;;  %v863_v35 = vadd.f32 %v862_v13, %v3725_v24  ;;  %v857_v13 = vadd.f32 %v856_v41, %v3723_v22 }
 0x19f   :  { %v864_v25 = vpop.f32.mrf.mxu0  ;;  %1182 = vmatprep.mubr.f32.mxu0 %v5030_v45  ;;  %v958_v33 = vadd.f32 %v957_v11, %v3725_v24  ;;  %v948_v11 = vadd.f32 %v947_v18, %v3729_v12  ;;  %v5077_v18 = vmax.f32 %v3482_v48, 0.0  ;;  %v980_v48 = vmax.f32 %v3920_v44, 0.0  ;;  %v5091_v44 = vld [vmem:[#allocation19_spill] sm:$0xff] }
 0x1a0   :  { %v959_v17 = vpop.f32.mrf.mxu1  ;;  %v865_v20 = vadd.f32 %v864_v25, %v3725_v24  ;;  %v954_v25 = vadd.f32 %v953_v4, %v3723_v22  ;;  %v989_v4 = vmax.f32 %v859_v34, 0.0  ;;  %v5076_v22 = vmax.f32 %v3474_v19, 0.0 }
 0x1a1   :  { %2862 = vmatmul.mubr.msk.f32.gmra.mxu1 %vm572_vm0, %v3887_v59  ;;  %v868_v30 = vpop.f32.mrf.mxu0  ;;  %v960_v62 = vadd.f32 %v959_v17, %v3725_v24  ;;  %v5079_v19 = vmax.f32 %v3484_v47, 0.0  ;;  %v973_v47 = vmax.f32 %v3910_v40, 0.0 }
 0x1a2   :  { %1277 = vmatprep.mubr.f32.mxu1 %v5030_v45  ;;  %v869_v1 = vadd.f32 %v868_v30, %v3721_v38  ;;  %v963_v43 = vpop.f32.mrf.mxu1  ;;  %2858 = vmatmul.mubr.msk.f32.gmra.mxu0 %vm572_vm0, %v3898_v31  ;;  %v997_v8 = vmax.f32 %v865_v20, 0.0  ;;  %v988_v20 = vmax.f32 %v857_v13, 0.0  ;;  %v983_v13 = vmax.f32 %v948_v11, 0.0 }
 0x1a3   :  { %v964_v6 = vadd.f32 %v963_v43, %v3721_v38  ;;  %v870_v52 = vpop.f32.mrf.mxu0  ;;  %1188 = vmatprep.mubr.f32.mxu0 %v5030_v45  ;;  %v999_v15 = vmax.f32 %v960_v62, 0.0  ;;  %v5078_v62 = vmax.f32 %v3476_v51, 0.0  ;;  %v5082_v51 = vld [vmem:[#allocation18_spill] sm:$0xff]  ;;  %v5092_v11 = vmax.f32 %v5091_v44, 0.0 }
 0x1a4   :  { %v871_v26 = vadd.f32 %v870_v52, %v3721_v38  ;;  %v965_v60 = vpop.f32.mrf.mxu1  ;;  %v1004_v17 = vmax.f32 %v869_v1, 0.0  ;;  %v996_v52 = vmax.f32 %v863_v35, 0.0  ;;  %v998_v1 = vmax.f32 %v958_v33, 0.0  ;;  %v5115_v44 = vld [vmem:[#allocation22_spill] sm:$0xff] }
 0x1a5   :  { %2863 = vmatmul.mubr.msk.f32.gmra.mxu1 %vm572_vm0, %v3898_v31  ;;  %v966_v30 = vadd.f32 %v965_v60, %v3721_v38  ;;  %v1006_v43 = vmax.f32 %v964_v6, 0.0  ;;  %v946_v38 = vadd.f32 %v3866_v42, %v3729_v12  ;;  %v991_v6 = vmax.f32 %v954_v25, 0.0 }
 0x1a6   :  { %1283 = vmatprep.mubr.f32.mxu1 %v5030_v45  ;;  %v1005_v24 = vmax.f32 %v871_v26, 0.0  ;;  %2859 = vmatmul.mubr.msk.f32.gmra.mxu0 %vm572_vm0, %v3929_v46  ;;  %v3956_v35 = vadd.f32 %v1004_v17, %v5077_v18  ;;  %v981_v12 = vmax.f32 %v853_v29, 0.0  ;;  %v990_v42 = vmax.f32 %v952_v58, 0.0 }
 0x1a7   :  { %v1007_v41 = vmax.f32 %v966_v30, 0.0  ;;  %1354 = vmatprep.mubr.f32.mxu0 %v5030_v45  ;;  %v3965_v34 = vadd.f32 %v997_v8, %v5079_v19  ;;  %v5080_v33 = vmax.f32 %v3497_v63, 0.0  ;;  %v5083_v25 = vmax.f32 %v5082_v51, 0.0  ;;  %v5085_v30 = vld [vmem:[#allocation17_spill] sm:$0xff]  ;;  %v5088_v8 = vld [vmem:[#allocation8_spill] sm:$0xff] }
 0x1a8   :  { %v3950_v53 = vadd.f32 %v1005_v24, %v5076_v22  ;;  %v5086_v29 = vmax.f32 %v5085_v30, 0.0  ;;  %v982_v63 = vmax.f32 %v946_v38, 0.0  ;;  %v5094_v22 = vld [vmem:[#allocation16_spill] sm:$0xff]  ;;  %v5097_v38 = vld [vmem:[#allocation9_spill] sm:$0xff] }
 0x1a9   :  { %2864 = vmatmul.mubr.msk.f32.gmra.mxu1 %vm572_vm0, %v3929_v46  ;;  %v3960_v26 = vadd.f32 %v1007_v41, %v5078_v62  ;;  %v3969_v60 = vadd.f32 %v1006_v43, %v5080_v33  ;;  %v3975_v17 = vadd.f32 %v996_v52, %v5083_v25  ;;  %v5089_v43 = vmax.f32 %v5088_v8, 0.0  ;;  %v5100_v19 = vld [vmem:[#allocation20_spill] sm:$0xff] }
 0x1aa   :  { %1449 = vmatprep.mubr.f32.mxu1 %v5030_v45  ;;  %1312 = vmatprep.subr.mxu0 %v3950_v53  ;;  %v3979_v58 = vadd.f32 %v999_v15, %v5086_v29  ;;  %v3990_v41 = vadd.f32 %v998_v1, %v5092_v11  ;;  %v972_v15 = vmax.f32 %v3903_v39, 0.0  ;;  %v975_v52 = vmax.f32 %v3913_v36, 0.0  ;;  %v5103_v39 = vld [vmem:[#allocation11_spill] sm:$0xff]  ;;  %v5109_v29 = vld [vmem:[#allocation10_spill] sm:$0xff] }
 0x1ab   :  { %5081 = vst [vmem:[#allocation14_spill] sm:$0xff] %v3969_v60  ;;  %5084 = vst [vmem:[#allocation13_spill] sm:$0xff] %v3975_v17  ;;  %1407 = vmatprep.subr.mxu1 %v3960_v26  ;;  %1313 = vmatpush1.msra.mxu0 %v3956_v35  ;;  %v3986_v24 = vadd.f32 %v989_v4, %v5089_v43  ;;  %v5095_v18 = vmax.f32 %v5094_v22, 0.0  ;;  %v5098_v62 = vmax.f32 %v5097_v38, 0.0  ;;  %v974_v1 = vmax.f32 %v3906_v54, 0.0  ;;  %v5112_v54 = vld [vmem:[#allocation23_spill] sm:$0xff] }
 0x1ac   :  { %5087 = vst [vmem:[#allocation15_spill] sm:$0xff] %v3979_v58  ;;  %5093 = vst [vmem:[#allocation17_spill] sm:$0xff] %v3990_v41  ;;  %1408 = vmatpush1.msra.mxu1 %v3969_v60  ;;  %1314 = vmatprep.subr.mxu0 %v3965_v34  ;;  %v5101_v33 = vmax.f32 %v5100_v19, 0.0  ;;  %v5104_v36 = vmax.f32 %v5103_v39, 0.0  ;;  %v5110_v8 = vmax.f32 %v5109_v29, 0.0  ;;  %v5116_v11 = vmax.f32 %v5115_v44, 0.0 }
 0x1ad   :  { %5090 = vst [vmem:[#allocation18_spill] sm:$0xff] %v3986_v24  ;;  %v3998_v40 = vadd.f32 %v988_v20, %v5095_v18  ;;  %v4002_v4 = vadd.f32 %v991_v6, %v5098_v62  ;;  %1409 = vmatprep.subr.mxu1 %v3979_v58  ;;  %1315 = vmatpush1.msra.mxu0 %v3975_v17  ;;  %v5106_v20 = vld [vmem:[#allocation21_spill] sm:$0xff]  ;;  %v5121_v38 = vld [vmem:[#allocation24_spill] sm:$0xff] }
 0x1ae   :  { %v4009_v51 = vadd.f32 %v981_v12, %v5101_v33  ;;  %v4013_v25 = vadd.f32 %v990_v42, %v5104_v36  ;;  %1410 = vmatpush1.msra.mxu1 %v3990_v41  ;;  %1316 = vmatprep.subr.mxu0 %v3986_v24  ;;  %v5107_v6 = vmax.f32 %v5106_v20, 0.0  ;;  %v4023_v43 = vadd.f32 %v983_v13, %v5110_v8 }
 0x1af   :  { %5096 = vst [vmem:[#allocation8_spill] sm:$0xff] %v3998_v40  ;;  %5099 = vst [vmem:[#allocation19_spill] sm:$0xff] %v4002_v4  ;;  %1411 = vmatprep.subr.mxu1 %v4002_v4  ;;  %1317 = vmatpush1.msra.mxu0 %v3998_v40  ;;  %v5113_v12 = vmax.f32 %v5112_v54, 0.0  ;;  %v4033_v22 = vadd.f32 %v982_v63, %v5116_v11  ;;  %v5122_v62 = vmax.f32 %v5121_v38, 0.0 }
 0x1b0   :  { %5102 = vst [vmem:[#allocation16_spill] sm:$0xff] %v4009_v51  ;;  %5105 = vst [vmem:[#allocation9_spill] sm:$0xff] %v4013_v25  ;;  %v4019_v30 = vadd.f32 %v980_v48, %v5107_v6  ;;  %1412 = vmatpush1.msra.mxu1 %v4013_v25  ;;  %1318 = vmatprep.subr.mxu0 %v4009_v51  ;;  %v5118_v48 = vld [vmem:[#allocation25_spill] sm:$0xff] }
 0x1b1   :  { %5111 = vst [vmem:[#allocation11_spill] sm:$0xff] %v4023_v43  ;;  %v4029_v42 = vadd.f32 %v973_v47, %v5113_v12  ;;  %5117 = vst [vmem:[#allocation10_spill] sm:$0xff] %v4033_v22  ;;  %v5119_v18 = vmax.f32 %v5118_v48, 0.0  ;;  %v4043_v19 = vadd.f32 %v975_v52, %v5122_v62  ;;  %1413 = vmatprep.subr.mxu1 %v4023_v43  ;;  %v5124_v47 = vld [vmem:[#allocation26_spill] sm:$0xff] }
 0x1b2   :  { %5108 = vst [vmem:[#allocation20_spill] sm:$0xff] %v4019_v30  ;;  %1319 = vmatpush1.msra.mxu0 %v4019_v30  ;;  %v5125_v33 = vmax.f32 %v5124_v47, 0.0  ;;  %1414 = vmatpush1.msra.mxu1 %v4033_v22 }
 0x1b3   :  { %5114 = vst [vmem:[#allocation21_spill] sm:$0xff] %v4029_v42  ;;  %v4039_v13 = vadd.f32 %v972_v15, %v5119_v18  ;;  %5123 = vst [vmem:[#allocation22_spill] sm:$0xff] %v4043_v19  ;;  %1320 = vmatprep.subr.mxu0 %v4029_v42  ;;  %1415 = vmatprep.subr.mxu1 %v4043_v19  ;;  %v4086_v15 = vpop.permute.xlu0 %1082 }
 0x1b4   :  { %v4049_v63 = vadd.f32 %v974_v1, %v5125_v33 }
 0x1b5   :  { %5120 = vst [vmem:[#allocation23_spill] sm:$0xff] %v4039_v13  ;;  %1321 = vmatpush1.msra.mxu0 %v4039_v13 }
 0x1b6   :  { %5126 = vst [vmem:[#allocation25_spill] sm:$0xff] %v4049_v63  ;;  %1416 = vmatpush1.msra.mxu1 %v4049_v63  ;;  %2865 = vmatmul.mubr.msk.f32.vlgmr.msra.gmra.mxu0 %vm572_vm0, %v3852_v27 }
 0x1b7   :  { %2870 = vmatmul.mubr.msk.f32.vlgmr.msra.gmra.mxu1 %vm572_vm0, %v3852_v27  ;;  %1360 = vmatprep.mubr.f32.mxu0 %v5030_v45  ;;  %v4088_v6 = vpop.permute.xlu0 %1072 }
 0x1b8   :  { %1455 = vmatprep.mubr.f32.mxu1 %v5030_v45 }
 0x1ba   :  { %2866 = vmatmul.mubr.msk.f32.gmra.mxu0 %vm572_vm0, %v3876_v2 }
 0x1bb   :  { %2871 = vmatmul.mubr.msk.f32.gmra.mxu1 %vm572_vm0, %v3876_v2  ;;  %1366 = vmatprep.mubr.f32.mxu0 %v5030_v45  ;;  %v4092_v48 = vpop.permute.xlu0 %1062 }
 0x1bc   :  { %1461 = vmatprep.mubr.f32.mxu1 %v5030_v45 }
 0x1be   :  { %2867 = vmatmul.mubr.msk.f32.gmra.mxu0 %vm572_vm0, %v3887_v59 }
 0x1bf   :  { %2872 = vmatmul.mubr.msk.f32.gmra.mxu1 %vm572_vm0, %v3887_v59  ;;  %1372 = vmatprep.mubr.f32.mxu0 %v5030_v45 }
 0x1c0   :  { %1467 = vmatprep.mubr.f32.mxu1 %v5030_v45 }
 0x1c2   :  { %2868 = vmatmul.mubr.msk.f32.gmra.mxu0 %vm572_vm0, %v3898_v31 }
 0x1c3   :  { %2873 = vmatmul.mubr.msk.f32.gmra.mxu1 %vm572_vm0, %v3898_v31  ;;  %1378 = vmatprep.mubr.f32.mxu0 %v5030_v45 }
 0x1c4   :  { %1473 = vmatprep.mubr.f32.mxu1 %v5030_v45 }
 0x1c6   :  { %2869 = vmatmul.mubr.msk.f32.gmra.mxu0 %vm572_vm0, %v3929_v46 }
 0x1c7   :  { %2874 = vmatmul.mubr.msk.f32.gmra.mxu1 %vm572_vm0, %v3929_v46  ;;  %1676 = vmatprep.mubr.f32.mxu0 %v5030_v45  ;;  %v4090_v46 = vpop.permute.xlu1 %1077 }
 0x1c8   :  { %1771 = vmatprep.mubr.f32.mxu1 %v5030_v45 }
 0x1cb   :  { %v4094_v62 = vpop.permute.xlu1 %1067 }
 0x256   :  { %v1166_v27 = vpop.f32.mrf.mxu0 }
 0x257   :  { %v4097_v47 = vadd.f32 %v1166_v27, %v4092_v48 }
 0x258   :  { %v1168_v59 = vpop.f32.mrf.mxu0 }
 0x259   :  { %v1261_v2 = vpop.f32.mrf.mxu1  ;;  %v4103_v63 = vadd.f32 %v1168_v59, %v4092_v48 }
 0x25a   :  { %v1172_v52 = vpop.f32.mrf.mxu0  ;;  %v4100_v33 = vadd.f32 %v1261_v2, %v4092_v48 }
 0x25b   :  { %v1263_v31 = vpop.f32.mrf.mxu1  ;;  %v1173_v30 = vadd.f32 %v1172_v52, %v4094_v62 }
 0x25c   :  { %v1174_v39 = vpop.f32.mrf.mxu0  ;;  %v4106_v19 = vadd.f32 %v1263_v31, %v4092_v48 }
 0x25d   :  { %v1267_v1 = vpop.f32.mrf.mxu1  ;;  %v1175_v59 = vadd.f32 %v1174_v39, %v4094_v62 }
 0x25e   :  { %v1178_v20 = vpop.f32.mrf.mxu0 }
 0x25f   :  { %v1269_v36 = vpop.f32.mrf.mxu1 }
 0x260   :  { %v1180_v8 = vpop.f32.mrf.mxu0  ;;  %v1270_v39 = vadd.f32 %v1269_v36, %v4094_v62 }
 0x261   :  { %v1273_v29 = vpop.f32.mrf.mxu1  ;;  %v1181_v51 = vadd.f32 %v1180_v8, %v4088_v6 }
 0x262   :  { %v1184_v12 = vpop.f32.mrf.mxu0 }
 0x263   :  { %v1275_v54 = vpop.f32.mrf.mxu1  ;;  %v1185_v27 = vadd.f32 %v1184_v12, %v4090_v46  ;;  %v1497_v17 = vmax.f32 %v1181_v51, 0.0 }
 0x264   :  { %v1186_v11 = vpop.f32.mrf.mxu0  ;;  %v1276_v40 = vadd.f32 %v1275_v54, %v4088_v6 }
 0x265   :  { %v1279_v44 = vpop.f32.mrf.mxu1  ;;  %v1187_v13 = vadd.f32 %v1186_v11, %v4090_v46  ;;  %v1504_v8 = vmax.f32 %v1185_v27, 0.0 }
 0x266   :  { %v1190_v38 = vpop.f32.mrf.mxu0  ;;  %v1280_v31 = vadd.f32 %v1279_v44, %v4090_v46  ;;  %v1499_v54 = vmax.f32 %v1276_v40, 0.0 }
 0x267   :  { %v1281_v18 = vpop.f32.mrf.mxu1  ;;  %v1191_v22 = vadd.f32 %v1190_v38, %v4086_v15  ;;  %v1179_v38 = vadd.f32 %v1178_v20, %v4088_v6  ;;  %v1505_v41 = vmax.f32 %v1187_v13, 0.0  ;;  %v4141_v40 = vadd.f32 %v1504_v8, %v3778_v16  ;;  %v4245_v8 = vld [vmem:[%s4904_s3 + $0x68] sm:$0xff] }
 0x268   :  { %v1192_v43 = vpop.f32.mrf.mxu0  ;;  %v1282_v25 = vadd.f32 %v1281_v18, %v4090_v46  ;;  %v1274_v18 = vadd.f32 %v1273_v29, %v4088_v6  ;;  %v1506_v60 = vmax.f32 %v1280_v31, 0.0  ;;  %v1489_v29 = vmax.f32 %v1175_v59, 0.0 }
 0x269   :  { %v1285_v42 = vpop.f32.mrf.mxu1  ;;  %v1193_v11 = vadd.f32 %v1192_v43, %v4086_v15  ;;  %v1512_v52 = vmax.f32 %v1191_v22, 0.0  ;;  %v1268_v43 = vadd.f32 %v1267_v1, %v4094_v62  ;;  %v1496_v22 = vmax.f32 %v1179_v38, 0.0 }
 0x26a   :  { %v1286_v2 = vadd.f32 %v1285_v42, %v4086_v15  ;;  %v1507_v58 = vmax.f32 %v1282_v25, 0.0  ;;  %v1498_v36 = vmax.f32 %v1274_v18, 0.0  ;;  %v4134_v25 = vadd.f32 %v1505_v41, %v3769_v49 }
 0x26b   :  { %v1287_v4 = vpop.f32.mrf.mxu1  ;;  %v1513_v24 = vmax.f32 %v1193_v11, 0.0  ;;  %v1481_v49 = vmax.f32 %v4103_v63, 0.0  ;;  %v4153_v41 = vadd.f32 %v1506_v60, %v3803_v28  ;;  %v1480_v16 = vmax.f32 %v4097_v47, 0.0 }
 0x26c   :  { %v1288_v12 = vadd.f32 %v1287_v4, %v4086_v15  ;;  %v1514_v42 = vmax.f32 %v1286_v2, 0.0  ;;  %v4128_v4 = vadd.f32 %v1512_v52, %v3765_v37  ;;  %v4144_v37 = vadd.f32 %v1507_v58, %v3792_v21  ;;  %v4223_v2 = vld [vmem:[%s4904_s3 + $0x58] sm:$0xff]  ;;  %v4234_v52 = vld [vmem:[%s4904_s3 + $0x60] sm:$0xff] }
 0x26d   :  { %v4125_v20 = vadd.f32 %v1513_v24, %v3760_v0  ;;  %v1488_v0 = vmax.f32 %v1173_v30, 0.0  ;;  %v1491_v24 = vmax.f32 %v1270_v39, 0.0  ;;  %v1483_v21 = vmax.f32 %v4106_v19, 0.0 }
 0x26e   :  { %v1515_v44 = vmax.f32 %v1288_v12, 0.0  ;;  %v4137_v1 = vadd.f32 %v1514_v42, %v3782_v61  ;;  %v4150_v61 = vadd.f32 %v1497_v17, %v3788_v5  ;;  %v4160_v58 = vadd.f32 %v1496_v22, %v3799_v9 }
 0x26f   :  { %1634 = vmatprep.subr.mxu0 %v4125_v20  ;;  %v4163_v51 = vadd.f32 %v1499_v54, %v3814_v23  ;;  %v1482_v5 = vmax.f32 %v4100_v33, 0.0  ;;  %v4169_v28 = vadd.f32 %v1489_v29, %v3810_v32  ;;  %v4172_v60 = vadd.f32 %v1498_v36, %v3825_v50 }
 0x270   :  { %v4131_v13 = vadd.f32 %v1515_v44, %v3773_v3  ;;  %1635 = vmatpush1.msra.mxu0 %v4128_v4  ;;  %v1490_v3 = vmax.f32 %v1268_v43, 0.0  ;;  %v4177_v9 = vadd.f32 %v1488_v0, %v3821_v55  ;;  %v4180_v23 = vadd.f32 %v1491_v24, %v3835_v14 }
 0x271   :  { %1636 = vmatprep.subr.mxu0 %v4134_v25  ;;  %v4185_v32 = vadd.f32 %v1481_v49, %v3831_v10  ;;  %v4193_v55 = vadd.f32 %v1480_v16, %v3841_v7  ;;  %v4196_v14 = vadd.f32 %v1483_v21, %v3856_v57  ;;  %v4203_v10 = vld [vmem:[%s4904_s3 + $0x50] sm:$0xff] }
 0x272   :  { %1729 = vmatprep.subr.mxu1 %v4131_v13  ;;  %1637 = vmatpush1.msra.mxu0 %v4141_v40  ;;  %v4188_v50 = vadd.f32 %v1490_v3, %v3845_v56  ;;  %v5127_v56 = vld [vmem:[#allocation12_spill] sm:$0xff] }
 0x273   :  { %1730 = vmatpush1.msra.mxu1 %v4137_v1  ;;  %1638 = vmatprep.subr.mxu0 %v4150_v61  ;;  %v4206_v47 = vadd.f32 %v1482_v5, %v5127_v56  ;;  %v4282_v56 = vld [vmem:[%s4904_s3 + $0x70] sm:$0xff] }
 0x274   :  { %1731 = vmatprep.subr.mxu1 %v4144_v37  ;;  %1639 = vmatpush1.msra.mxu0 %v4160_v58 }
 0x275   :  { %1732 = vmatpush1.msra.mxu1 %v4153_v41  ;;  %1640 = vmatprep.subr.mxu0 %v4169_v28  ;;  %5128 = vst [vmem:[#allocation24_spill] sm:$0xff] %v4206_v47 }
 0x276   :  { %v1356_v17 = vpop.f32.mrf.mxu0  ;;  %1733 = vmatprep.subr.mxu1 %v4163_v51  ;;  %1641 = vmatpush1.msra.mxu0 %v4177_v9 }
 0x277   :  { %v1451_v30 = vpop.f32.mrf.mxu1  ;;  %1734 = vmatpush1.msra.mxu1 %v4172_v60  ;;  %1642 = vmatprep.subr.mxu0 %v4185_v32  ;;  %v4248_v44 = vadd.f32 %v1356_v17, %v4092_v48 }
 0x278   :  { %v1358_v19 = vpop.f32.mrf.mxu0  ;;  %1735 = vmatprep.subr.mxu1 %v4180_v23  ;;  %1643 = vmatpush1.msra.mxu0 %v4193_v55  ;;  %v4251_v43 = vadd.f32 %v1451_v30, %v4092_v48 }
 0x279   :  { %v1453_v63 = vpop.f32.mrf.mxu1  ;;  %1736 = vmatpush1.msra.mxu1 %v4188_v50  ;;  %2885 = vmatmul.mubr.msk.f32.vlgmr.msra.gmra.mxu0 %vm572_vm0, %v4203_v10  ;;  %v4254_v22 = vadd.f32 %v1358_v19, %v4092_v48 }
 0x27a   :  { %v1362_v33 = vpop.f32.mrf.mxu0  ;;  %1737 = vmatprep.subr.mxu1 %v4196_v14  ;;  %1682 = vmatprep.mubr.f32.mxu0 %v5030_v45  ;;  %v4258_v29 = vadd.f32 %v1453_v63, %v4092_v48 }
 0x27b   :  { %v4210_v7 = vpop.f32.mrf.mxu1  ;;  %1738 = vmatpush1.msra.mxu1 %v4206_v47  ;;  %v4261_v36 = vadd.f32 %v1362_v33, %v4094_v62 }
 0x27c   :  { %v1364_v57 = vpop.f32.mrf.mxu0  ;;  %2890 = vmatmul.mubr.msk.f32.vlgmr.msra.gmra.mxu1 %vm572_vm0, %v4203_v10 }
 0x27d   :  { %v1459_v27 = vpop.f32.mrf.mxu1  ;;  %1777 = vmatprep.mubr.f32.mxu1 %v5030_v45  ;;  %2886 = vmatmul.mubr.msk.f32.gmra.mxu0 %vm572_vm0, %v4223_v2  ;;  %v4266_v3 = vadd.f32 %v1364_v57, %v4094_v62 }
 0x27e   :  { %v1368_v59 = vpop.f32.mrf.mxu0  ;;  %1688 = vmatprep.mubr.f32.mxu0 %v5030_v45 }
 0x27f   :  { %v1463_v31 = vpop.f32.mrf.mxu1  ;;  %v1369_v33 = vadd.f32 %v1368_v59, %v4088_v6  ;;  %v1458_v59 = vadd.f32 %v4210_v7, %v4094_v62 }
 0x280   :  { %v1370_v11 = vpop.f32.mrf.mxu0  ;;  %2891 = vmatmul.mubr.msk.f32.gmra.mxu1 %vm572_vm0, %v4223_v2 }
 0x281   :  { %v1465_v38 = vpop.f32.mrf.mxu1  ;;  %1783 = vmatprep.mubr.f32.mxu1 %v5030_v45  ;;  %2887 = vmatmul.mubr.msk.f32.gmra.mxu0 %vm572_vm0, %v4234_v52  ;;  %v1371_v48 = vadd.f32 %v1370_v11, %v4088_v6 }
 0x282   :  { %v1374_v12 = vpop.f32.mrf.mxu0  ;;  %1694 = vmatprep.mubr.f32.mxu0 %v5030_v45  ;;  %v1466_v57 = vadd.f32 %v1465_v38, %v4088_v6 }
 0x283   :  { %v1469_v18 = vpop.f32.mrf.mxu1  ;;  %v1375_v16 = vadd.f32 %v1374_v12, %v4090_v46  ;;  %v1464_v12 = vadd.f32 %v1463_v31, %v4088_v6  ;;  %v1501_v38 = vmax.f32 %v1371_v48, 0.0  ;;  %v1500_v6 = vmax.f32 %v1369_v33, 0.0  ;;  %v5131_v48 = vld [vmem:[#allocation13_spill] sm:$0xff] }
 0x284   :  { %v1376_v42 = vpop.f32.mrf.mxu0  ;;  %2892 = vmatmul.mubr.msk.f32.gmra.mxu1 %vm572_vm0, %v4234_v52  ;;  %v1470_v30 = vadd.f32 %v1469_v18, %v4090_v46  ;;  %v5137_v33 = vld [vmem:[#allocation17_spill] sm:$0xff] }
 0x285   :  { %v1471_v39 = vpop.f32.mrf.mxu1  ;;  %1789 = vmatprep.mubr.f32.mxu1 %v5030_v45  ;;  %v1377_v0 = vadd.f32 %v1376_v42, %v4090_v46  ;;  %2888 = vmatmul.mubr.msk.f32.gmra.mxu0 %vm572_vm0, %v4245_v8  ;;  %v1502_v7 = vmax.f32 %v1464_v12, 0.0 }
 0x286   :  { %v1380_v54 = vpop.f32.mrf.mxu0  ;;  %v1472_v21 = vadd.f32 %v1471_v39, %v4090_v46  ;;  %1700 = vmatprep.mubr.f32.mxu0 %v5030_v45 }
 0x287   :  { %v1381_v24 = vadd.f32 %v1380_v54, %v4086_v15  ;;  %v1475_v49 = vpop.f32.mrf.mxu1  ;;  %v1509_v18 = vmax.f32 %v1377_v0, 0.0  ;;  %v1460_v54 = vadd.f32 %v1459_v27, %v4094_v62  ;;  %v1503_v27 = vmax.f32 %v1466_v57, 0.0 }
 0x288   :  { %v1476_v5 = vadd.f32 %v1475_v49, %v4086_v15  ;;  %v1382_v17 = vpop.f32.mrf.mxu0  ;;  %2893 = vmatmul.mubr.msk.f32.gmra.mxu1 %vm572_vm0, %v4245_v8  ;;  %v1508_v49 = vmax.f32 %v1375_v16, 0.0  ;;  %v1493_v62 = vmax.f32 %v4266_v3, 0.0  ;;  %v5129_v16 = vld [vmem:[#allocation14_spill] sm:$0xff]  ;;  %v1494_v3 = vmax.f32 %v1458_v59, 0.0  ;;  %v5149_v59 = vld [vmem:[#allocation11_spill] sm:$0xff] }
 0x289   :  { %v1383_v19 = vadd.f32 %v1382_v17, %v4086_v15  ;;  %v1477_v63 = vpop.f32.mrf.mxu1  ;;  %v1516_v11 = vmax.f32 %v1381_v24, 0.0  ;;  %1795 = vmatprep.mubr.f32.mxu1 %v5030_v45  ;;  %v1511_v17 = vmax.f32 %v1472_v21, 0.0  ;;  %2889 = vmatmul.mubr.msk.f32.gmra.mxu0 %vm572_vm0, %v4282_v56 }
 0x28a   :  { %v1478_v46 = vadd.f32 %v1477_v63, %v4086_v15  ;;  %v1518_v42 = vmax.f32 %v1476_v5, 0.0  ;;  %v1510_v15 = vmax.f32 %v1470_v30, 0.0  ;;  %1866 = vmatprep.mubr.f32.mxu0 %v5030_v45  ;;  %v1492_v5 = vmax.f32 %v4261_v36, 0.0 }
 0x28b   :  { %v1517_v39 = vmax.f32 %v1383_v19, 0.0  ;;  %v4301_v31 = vadd.f32 %v1516_v11, %v3956_v35  ;;  %v1495_v35 = vmax.f32 %v1460_v54, 0.0  ;;  %v4317_v30 = vadd.f32 %v1508_v49, %v5131_v48  ;;  %v5135_v19 = vld [vmem:[#allocation18_spill] sm:$0xff]  ;;  %v5145_v49 = vld [vmem:[#allocation9_spill] sm:$0xff] }
 0x28c   :  { %v1519_v47 = vmax.f32 %v1478_v46, 0.0  ;;  %2894 = vmatmul.mubr.msk.f32.gmra.mxu1 %vm572_vm0, %v4282_v56  ;;  %v4312_v21 = vadd.f32 %v1518_v42, %v5129_v16  ;;  %v4326_v63 = vadd.f32 %v1501_v38, %v5135_v19  ;;  %v4329_v57 = vadd.f32 %v1510_v15, %v5137_v33  ;;  %v5139_v46 = vld [vmem:[#allocation8_spill] sm:$0xff]  ;;  %v5157_v16 = vld [vmem:[#allocation22_spill] sm:$0xff] }
 0x28d   :  { %v4295_v24 = vadd.f32 %v1517_v39, %v3950_v53  ;;  %1961 = vmatprep.mubr.f32.mxu1 %v5030_v45  ;;  %v4309_v53 = vadd.f32 %v1509_v18, %v3965_v34  ;;  %5132 = vst [vmem:[#allocation12_spill] sm:$0xff] %v4317_v30  ;;  %v1485_v34 = vmax.f32 %v4254_v22, 0.0  ;;  %v1484_v36 = vmax.f32 %v4248_v44, 0.0  ;;  %v5141_v18 = vld [vmem:[#allocation19_spill] sm:$0xff]  ;;  %v5143_v39 = vld [vmem:[#allocation16_spill] sm:$0xff] }
 0x28e   :  { %v4304_v0 = vadd.f32 %v1519_v47, %v3960_v26  ;;  %5130 = vst [vmem:[#allocation26_spill] sm:$0xff] %v4312_v21  ;;  %v5133_v26 = vld [vmem:[#allocation15_spill] sm:$0xff]  ;;  %5136 = vst [vmem:[#allocation13_spill] sm:$0xff] %v4326_v63  ;;  %v1487_v11 = vmax.f32 %v4258_v29, 0.0  ;;  %v4336_v12 = vadd.f32 %v1500_v6, %v5139_v46  ;;  %v4339_v22 = vadd.f32 %v1503_v27, %v5141_v18  ;;  %v5147_v44 = vld [vmem:[#allocation20_spill] sm:$0xff] }
 0x28f   :  { %1824 = vmatprep.subr.mxu0 %v4295_v24  ;;  %v4320_v47 = vadd.f32 %v1511_v17, %v5133_v26  ;;  %5138 = vst [vmem:[#allocation15_spill] sm:$0xff] %v4329_v57  ;;  %v1486_v42 = vmax.f32 %v4251_v43, 0.0  ;;  %v4345_v54 = vadd.f32 %v1493_v62, %v5143_v39  ;;  %v4348_v17 = vadd.f32 %v1502_v7, %v5145_v49  ;;  %v5151_v43 = vld [vmem:[#allocation21_spill] sm:$0xff]  ;;  %v5153_v6 = vld [vmem:[#allocation10_spill] sm:$0xff]  ;;  %v5155_v62 = vld [vmem:[#allocation23_spill] sm:$0xff]  ;;  %v4414_v26 = vpop.permute.xlu1 %1594 }
 0x290   :  { %1919 = vmatprep.subr.mxu1 %v4304_v0  ;;  %1825 = vmatpush1.msra.mxu0 %v4301_v31  ;;  %5140 = vst [vmem:[#allocation18_spill] sm:$0xff] %v4336_v12  ;;  %5142 = vst [vmem:[#allocation17_spill] sm:$0xff] %v4339_v22  ;;  %v4353_v29 = vadd.f32 %v1492_v5, %v5147_v44  ;;  %v4356_v38 = vadd.f32 %v1495_v35, %v5149_v59  ;;  %v5159_v35 = vld [vmem:[#allocation25_spill] sm:$0xff] }
 0x291   :  { %5134 = vst [vmem:[#allocation14_spill] sm:$0xff] %v4320_v47  ;;  %1920 = vmatpush1.msra.mxu1 %v4312_v21  ;;  %1826 = vmatprep.subr.mxu0 %v4309_v53  ;;  %5144 = vst [vmem:[#allocation8_spill] sm:$0xff] %v4345_v54  ;;  %v4361_v15 = vadd.f32 %v1485_v34, %v5151_v43  ;;  %v4364_v27 = vadd.f32 %v1494_v3, %v5153_v6 }
 0x292   :  { %1921 = vmatprep.subr.mxu1 %v4320_v47  ;;  %1827 = vmatpush1.msra.mxu0 %v4317_v30  ;;  %5146 = vst [vmem:[#allocation19_spill] sm:$0xff] %v4348_v17  ;;  %5148 = vst [vmem:[#allocation16_spill] sm:$0xff] %v4353_v29  ;;  %v4369_v7 = vadd.f32 %v1484_v36, %v5155_v62  ;;  %v4372_v5 = vadd.f32 %v1487_v11, %v5157_v16 }
 0x293   :  { %1922 = vmatpush1.msra.mxu1 %v4329_v57  ;;  %1828 = vmatprep.subr.mxu0 %v4326_v63  ;;  %5150 = vst [vmem:[#allocation9_spill] sm:$0xff] %v4356_v38  ;;  %5152 = vst [vmem:[#allocation20_spill] sm:$0xff] %v4361_v15  ;;  %v4377_v48 = vadd.f32 %v1486_v42, %v5159_v35  ;;  %v4416_v11 = vpop.permute.xlu1 %1584 }
 0x294   :  { %1923 = vmatprep.subr.mxu1 %v4339_v22  ;;  %1829 = vmatpush1.msra.mxu0 %v4336_v12  ;;  %5154 = vst [vmem:[#allocation11_spill] sm:$0xff] %v4364_v27  ;;  %5156 = vst [vmem:[#allocation21_spill] sm:$0xff] %v4369_v7 }
 0x295   :  { %1924 = vmatpush1.msra.mxu1 %v4348_v17  ;;  %1830 = vmatprep.subr.mxu0 %v4345_v54  ;;  %5158 = vst [vmem:[#allocation10_spill] sm:$0xff] %v4372_v5  ;;  %5160 = vst [vmem:[#allocation23_spill] sm:$0xff] %v4377_v48 }
 0x296   :  { %1925 = vmatprep.subr.mxu1 %v4356_v38  ;;  %1831 = vmatpush1.msra.mxu0 %v4353_v29 }
 0x297   :  { %1926 = vmatpush1.msra.mxu1 %v4364_v27  ;;  %1832 = vmatprep.subr.mxu0 %v4361_v15  ;;  %v4420_v59 = vpop.permute.xlu1 %1574 }
 0x298   :  { %1927 = vmatprep.subr.mxu1 %v4372_v5  ;;  %1833 = vmatpush1.msra.mxu0 %v4369_v7 }
 0x299   :  { %1928 = vmatpush1.msra.mxu1 %v4377_v48  ;;  %2895 = vmatmul.mubr.msk.f32.vlgmr.msra.gmra.mxu0 %vm572_vm0, %v4203_v10 }
 0x29a   :  { %2900 = vmatmul.mubr.msk.f32.vlgmr.msra.gmra.mxu1 %vm572_vm0, %v4203_v10  ;;  %1872 = vmatprep.mubr.f32.mxu0 %v5030_v45 }
 0x29b   :  { %1967 = vmatprep.mubr.f32.mxu1 %v5030_v45 }
 0x29d   :  { %2896 = vmatmul.mubr.msk.f32.gmra.mxu0 %vm572_vm0, %v4223_v2 }
 0x29e   :  { %2901 = vmatmul.mubr.msk.f32.gmra.mxu1 %vm572_vm0, %v4223_v2  ;;  %1878 = vmatprep.mubr.f32.mxu0 %v5030_v45 }
 0x29f   :  { %1973 = vmatprep.mubr.f32.mxu1 %v5030_v45 }
 0x2a1   :  { %2897 = vmatmul.mubr.msk.f32.gmra.mxu0 %vm572_vm0, %v4234_v52 }
 0x2a2   :  { %2902 = vmatmul.mubr.msk.f32.gmra.mxu1 %vm572_vm0, %v4234_v52  ;;  %1884 = vmatprep.mubr.f32.mxu0 %v5030_v45 }
 0x2a3   :  { %1979 = vmatprep.mubr.f32.mxu1 %v5030_v45 }
 0x2a5   :  { %2898 = vmatmul.mubr.msk.f32.gmra.mxu0 %vm572_vm0, %v4245_v8 }
 0x2a6   :  { %2903 = vmatmul.mubr.msk.f32.gmra.mxu1 %vm572_vm0, %v4245_v8  ;;  %1890 = vmatprep.mubr.f32.mxu0 %v5030_v45 }
 0x2a7   :  { %1985 = vmatprep.mubr.f32.mxu1 %v5030_v45 }
 0x2a9   :  { %2899 = vmatmul.mubr.msk.f32.gmra.mxu0 %vm572_vm0, %v4282_v56 }
 0x2aa   :  { %2904 = vmatmul.mubr.msk.f32.gmra.mxu1 %vm572_vm0, %v4282_v56  ;;  %2188 = vmatprep.mubr.f32.mxu0 %v5030_v45  ;;  %v4418_v56 = vpop.permute.xlu0 %1589 }
 0x2ab   :  { %2283 = vmatprep.mubr.f32.mxu1 %v5030_v45 }
 0x2ae   :  { %v4428_v35 = vpop.permute.xlu0 %1579 }
 0x339   :  { %v1678_v10 = vpop.f32.mrf.mxu0 }
 0x33a   :  { %v4423_v6 = vadd.f32 %v1678_v10, %v4420_v59 }
 0x33b   :  { %v1680_v52 = vpop.f32.mrf.mxu0 }
 0x33c   :  { %v1773_v2 = vpop.f32.mrf.mxu1  ;;  %v4431_v48 = vadd.f32 %v1680_v52, %v4420_v59 }
 0x33d   :  { %v1684_v34 = vpop.f32.mrf.mxu0  ;;  %v4426_v62 = vadd.f32 %v1773_v2, %v4420_v59 }
 0x33e   :  { %v1775_v8 = vpop.f32.mrf.mxu1  ;;  %v1685_v10 = vadd.f32 %v1684_v34, %v4428_v35 }
 0x33f   :  { %v1686_v19 = vpop.f32.mrf.mxu0  ;;  %v4434_v5 = vadd.f32 %v1775_v8, %v4420_v59 }
 0x340   :  { %v1779_v3 = vpop.f32.mrf.mxu1  ;;  %v1687_v52 = vadd.f32 %v1686_v19, %v4428_v35 }
 0x341   :  { %v1690_v36 = vpop.f32.mrf.mxu0 }
 0x342   :  { %v1781_v33 = vpop.f32.mrf.mxu1 }
 0x343   :  { %v1692_v18 = vpop.f32.mrf.mxu0  ;;  %v1782_v19 = vadd.f32 %v1781_v33, %v4428_v35 }
 0x344   :  { %v1785_v46 = vpop.f32.mrf.mxu1  ;;  %v1693_v54 = vadd.f32 %v1692_v18, %v4416_v11 }
 0x345   :  { %v1696_v39 = vpop.f32.mrf.mxu0 }
 0x346   :  { %v1787_v42 = vpop.f32.mrf.mxu1  ;;  %v1697_v38 = vadd.f32 %v1696_v39, %v4418_v56  ;;  %v2009_v30 = vmax.f32 %v1693_v54, 0.0 }
 0x347   :  { %v1698_v44 = vpop.f32.mrf.mxu0  ;;  %v1788_v34 = vadd.f32 %v1787_v42, %v4416_v11 }
 0x348   :  { %v1791_v49 = vpop.f32.mrf.mxu1  ;;  %v1699_v7 = vadd.f32 %v1698_v44, %v4418_v56  ;;  %v2016_v18 = vmax.f32 %v1697_v38, 0.0 }
 0x349   :  { %v1702_v16 = vpop.f32.mrf.mxu0  ;;  %v1792_v8 = vadd.f32 %v1791_v49, %v4418_v56  ;;  %v2011_v42 = vmax.f32 %v1788_v34, 0.0  ;;  %v4562_v34 = vld [vmem:[%s4904_s3 + $0x88] sm:$0xff] }
 0x34a   :  { %v1793_v43 = vpop.f32.mrf.mxu1  ;;  %v1703_v27 = vadd.f32 %v1702_v16, %v4414_v26  ;;  %v1691_v16 = vadd.f32 %v1690_v36, %v4416_v11  ;;  %v4469_v54 = vadd.f32 %v2016_v18, %v4141_v40  ;;  %v1992_v40 = vmax.f32 %v4423_v6, 0.0  ;;  %v4573_v18 = vld [vmem:[%s4904_s3 + $0x90] sm:$0xff] }
 0x34b   :  { %v1794_v2 = vadd.f32 %v1793_v43, %v4418_v56  ;;  %v1704_v17 = vpop.f32.mrf.mxu0  ;;  %v1786_v43 = vadd.f32 %v1785_v46, %v4416_v11  ;;  %v2018_v21 = vmax.f32 %v1792_v8, 0.0 }
 0x34c   :  { %v1797_v15 = vpop.f32.mrf.mxu1  ;;  %v1705_v44 = vadd.f32 %v1704_v17, %v4414_v26  ;;  %v2024_v12 = vmax.f32 %v1703_v27, 0.0  ;;  %v1780_v17 = vadd.f32 %v1779_v3, %v4428_v35  ;;  %v2008_v27 = vmax.f32 %v1691_v16, 0.0 }
 0x34d   :  { %v1798_v29 = vadd.f32 %v1797_v15, %v4414_v26  ;;  %v2017_v15 = vmax.f32 %v1699_v7, 0.0  ;;  %v2019_v47 = vmax.f32 %v1794_v2, 0.0  ;;  %v2001_v7 = vmax.f32 %v1687_v52, 0.0  ;;  %v4551_v2 = vld [vmem:[%s4904_s3 + $0x80] sm:$0xff] }
 0x34e   :  { %v1799_v22 = vpop.f32.mrf.mxu1  ;;  %v2025_v63 = vmax.f32 %v1705_v44, 0.0  ;;  %v2010_v33 = vmax.f32 %v1786_v43, 0.0 }
 0x34f   :  { %v1800_v39 = vadd.f32 %v1799_v22, %v4414_v26  ;;  %v2026_v57 = vmax.f32 %v1798_v29, 0.0  ;;  %v4456_v22 = vadd.f32 %v2024_v12, %v4128_v4  ;;  %v4462_v38 = vadd.f32 %v2017_v15, %v4134_v25 }
 0x350   :  { %v4453_v36 = vadd.f32 %v2025_v63, %v4125_v20  ;;  %v2000_v20 = vmax.f32 %v1685_v10, 0.0  ;;  %v2003_v63 = vmax.f32 %v1782_v19, 0.0  ;;  %v4472_v4 = vadd.f32 %v2019_v47, %v4144_v37 }
 0x351   :  { %v2027_v49 = vmax.f32 %v1800_v39, 0.0  ;;  %v4465_v3 = vadd.f32 %v2026_v57, %v4137_v1  ;;  %v2002_v25 = vmax.f32 %v1780_v17, 0.0  ;;  %v4478_v1 = vadd.f32 %v2009_v30, %v4150_v61 }
 0x352   :  { %2146 = vmatprep.subr.mxu0 %v4453_v36  ;;  %v4481_v57 = vadd.f32 %v2018_v21, %v4153_v41  ;;  %v1995_v37 = vmax.f32 %v4434_v5, 0.0  ;;  %v4488_v47 = vadd.f32 %v2008_v27, %v4160_v58  ;;  %v4491_v12 = vadd.f32 %v2011_v42, %v4163_v51 }
 0x353   :  { %v4459_v29 = vadd.f32 %v2027_v49, %v4131_v13  ;;  %2147 = vmatpush1.msra.mxu0 %v4456_v22  ;;  %v1993_v13 = vmax.f32 %v4431_v48, 0.0  ;;  %v1994_v61 = vmax.f32 %v4426_v62, 0.0  ;;  %v4497_v41 = vadd.f32 %v2001_v7, %v4169_v28 }
 0x354   :  { %2148 = vmatprep.subr.mxu0 %v4462_v38  ;;  %v4500_v21 = vadd.f32 %v2010_v33, %v4172_v60  ;;  %v4505_v58 = vadd.f32 %v2000_v20, %v4177_v9  ;;  %v4508_v51 = vadd.f32 %v2003_v63, %v4180_v23  ;;  %v4516_v60 = vadd.f32 %v2002_v25, %v4188_v50  ;;  %v5162_v50 = vld [vmem:[#allocation24_spill] sm:$0xff] }
 0x355   :  { %5161 = vst [vmem:[#allocation22_spill] sm:$0xff] %v4459_v29  ;;  %2241 = vmatprep.subr.mxu1 %v4459_v29  ;;  %2149 = vmatpush1.msra.mxu0 %v4469_v54  ;;  %v4513_v28 = vadd.f32 %v1993_v13, %v4185_v32  ;;  %v4521_v9 = vadd.f32 %v1992_v40, %v4193_v55  ;;  %v4531_v32 = vld [vmem:[%s4904_s3 + $0x78] sm:$0xff] }
 0x356   :  { %2242 = vmatpush1.msra.mxu1 %v4465_v3  ;;  %2150 = vmatprep.subr.mxu0 %v4478_v1  ;;  %v4524_v23 = vadd.f32 %v1995_v37, %v4196_v14  ;;  %v4534_v6 = vadd.f32 %v1994_v61, %v5162_v50  ;;  %v4610_v50 = vld [vmem:[%s4904_s3 + $0x98] sm:$0xff]  ;;  %s2975_s3 = smov [#allocation3]  }
 0x357   :  { %2243 = vmatprep.subr.mxu1 %v4472_v4  ;;  %2151 = vmatpush1.msra.mxu0 %v4488_v47  ;;  %s2817_s8 = sshll.u32 %s2975_s3, 4  ;;  %s2818_s8 = int_to_ptr.vmem [resolvable:$true] %s2817_s8 }
 0x358   :  { %2244 = vmatpush1.msra.mxu1 %v4481_v57  ;;  %2152 = vmatprep.subr.mxu0 %v4497_v41  ;;  %s2949_s6 = scalar_lea.vmem %s2818_s8, 128  ;;  %p2954_p1 = scmp.lt.s32.totalorder %s2818_s8, %s2818_s8 }
 0x359   :  { %v1868_v30 = vpop.f32.mrf.mxu0  ;;  %2245 = vmatprep.subr.mxu1 %v4491_v12  ;;  %2153 = vmatpush1.msra.mxu0 %v4505_v58  ;;  %p2950_p0 = scmp.ne.s32.totalorder %s2818_s8, %s2949_s6  ;;  %p2955_p2 = scmp.lt.s32.totalorder %s2949_s6, %s2949_s6 }
 0x35a   :  { %v1963_v5 = vpop.f32.mrf.mxu1  ;;  %2246 = vmatpush1.msra.mxu1 %v4500_v21  ;;  %2154 = vmatprep.subr.mxu0 %v4513_v28  ;;  %v4576_v49 = vadd.f32 %v1868_v30, %v4420_v59 }
 0x35b   :  { %v1870_v48 = vpop.f32.mrf.mxu0  ;;  %2247 = vmatprep.subr.mxu1 %v4508_v51  ;;  %2155 = vmatpush1.msra.mxu0 %v4521_v9  ;;  %v4579_v17 = vadd.f32 %v1963_v5, %v4420_v59  ;;  %p2956_p3 = por %p2955_p2, %p2954_p1 }
 0x35c   :  { %v1965_v46 = vpop.f32.mrf.mxu1  ;;  %2248 = vmatpush1.msra.mxu1 %v4516_v60  ;;  %2915 = vmatmul.mubr.msk.f32.vlgmr.msra.gmra.mxu0 %vm572_vm0, %v4531_v32  ;;  %v4582_v27 = vadd.f32 %v1870_v48, %v4420_v59 }
 0x35d   :  { %v1874_v62 = vpop.f32.mrf.mxu0  ;;  %2249 = vmatprep.subr.mxu1 %v4524_v23  ;;  %2194 = vmatprep.mubr.f32.mxu0 %v5030_v45  ;;  %v4586_v7 = vadd.f32 %v1965_v46, %v4420_v59  ;;  %p2957_p4 = pnand %p2956_p3, %p2950_p0 }
 0x35e   :  { %v4538_v55 = vpop.f32.mrf.mxu1  ;;  %2250 = vmatpush1.msra.mxu1 %v4534_v6  ;;  %v4589_v33 = vadd.f32 %v1874_v62, %v4428_v35 }
 0x35f   :  { %v1876_v14 = vpop.f32.mrf.mxu0  ;;  %2920 = vmatmul.mubr.msk.f32.vlgmr.msra.gmra.mxu1 %vm572_vm0, %v4531_v32 }
 0x360   :  { %v1971_v10 = vpop.f32.mrf.mxu1  ;;  %2289 = vmatprep.mubr.f32.mxu1 %v5030_v45  ;;  %2916 = vmatmul.mubr.msk.f32.gmra.mxu0 %vm572_vm0, %v4551_v2  ;;  %v4594_v25 = vadd.f32 %v1876_v14, %v4428_v35 }
 0x361   :  { %v1880_v52 = vpop.f32.mrf.mxu0  ;;  %2200 = vmatprep.mubr.f32.mxu0 %v5030_v45 }
 0x362   :  { %v1975_v8 = vpop.f32.mrf.mxu1  ;;  %v1881_v62 = vadd.f32 %v1880_v52, %v4416_v11  ;;  %v1970_v52 = vadd.f32 %v4538_v55, %v4428_v35 }
 0x363   :  { %v1882_v44 = vpop.f32.mrf.mxu0  ;;  %2921 = vmatmul.mubr.msk.f32.gmra.mxu1 %vm572_vm0, %v4551_v2 }
 0x364   :  { %v1977_v16 = vpop.f32.mrf.mxu1  ;;  %2295 = vmatprep.mubr.f32.mxu1 %v5030_v45  ;;  %2917 = vmatmul.mubr.msk.f32.gmra.mxu0 %vm572_vm0, %v4562_v34  ;;  %v1883_v59 = vadd.f32 %v1882_v44, %v4416_v11 }
 0x365   :  { %v1886_v39 = vpop.f32.mrf.mxu0  ;;  %2206 = vmatprep.mubr.f32.mxu0 %v5030_v45  ;;  %v1978_v14 = vadd.f32 %v1977_v16, %v4416_v11 }
 0x366   :  { %v1981_v43 = vpop.f32.mrf.mxu1  ;;  %v1887_v40 = vadd.f32 %v1886_v39, %v4418_v56  ;;  %v1976_v39 = vadd.f32 %v1975_v8, %v4416_v11  ;;  %v2013_v16 = vmax.f32 %v1883_v59, 0.0  ;;  %v2012_v11 = vmax.f32 %v1881_v62, 0.0  ;;  %v5166_v59 = vld [vmem:[#allocation12_spill] sm:$0xff]  ;;  %v5169_v62 = vld [vmem:[#allocation15_spill] sm:$0xff] }
 0x367   :  { %v1888_v15 = vpop.f32.mrf.mxu0  ;;  %2922 = vmatmul.mubr.msk.f32.gmra.mxu1 %vm572_vm0, %v4562_v34  ;;  %v1982_v5 = vadd.f32 %v1981_v43, %v4418_v56 }
 0x368   :  { %v1983_v19 = vpop.f32.mrf.mxu1  ;;  %2301 = vmatprep.mubr.f32.mxu1 %v5030_v45  ;;  %v1889_v20 = vadd.f32 %v1888_v15, %v4418_v56  ;;  %2918 = vmatmul.mubr.msk.f32.gmra.mxu0 %vm572_vm0, %v4573_v18  ;;  %v2014_v55 = vmax.f32 %v1976_v39, 0.0 }
 0x369   :  { %v1892_v42 = vpop.f32.mrf.mxu0  ;;  %v1984_v37 = vadd.f32 %v1983_v19, %v4418_v56  ;;  %2212 = vmatprep.mubr.f32.mxu0 %v5030_v45 }
 0x36a   :  { %v1893_v63 = vadd.f32 %v1892_v42, %v4414_v26  ;;  %v1987_v13 = vpop.f32.mrf.mxu1  ;;  %v2021_v43 = vmax.f32 %v1889_v20, 0.0  ;;  %v1972_v42 = vadd.f32 %v1971_v10, %v4428_v35  ;;  %v2015_v10 = vmax.f32 %v1978_v14, 0.0 }
 0x36b   :  { %v1988_v61 = vadd.f32 %v1987_v13, %v4414_v26  ;;  %v1894_v30 = vpop.f32.mrf.mxu0  ;;  %2923 = vmatmul.mubr.msk.f32.gmra.mxu1 %vm572_vm0, %v4573_v18  ;;  %v2020_v13 = vmax.f32 %v1887_v40, 0.0  ;;  %v2005_v35 = vmax.f32 %v4594_v25, 0.0  ;;  %v5165_v40 = vld [vmem:[#allocation26_spill] sm:$0xff]  ;;  %v2006_v25 = vmax.f32 %v1970_v52, 0.0  ;;  %v5175_v52 = vld [vmem:[#allocation9_spill] sm:$0xff] }
 0x36c   :  { %v1895_v48 = vadd.f32 %v1894_v30, %v4414_v26  ;;  %v1989_v46 = vpop.f32.mrf.mxu1  ;;  %v2028_v44 = vmax.f32 %v1893_v63, 0.0  ;;  %2307 = vmatprep.mubr.f32.mxu1 %v5030_v45  ;;  %v2023_v30 = vmax.f32 %v1984_v37, 0.0  ;;  %2919 = vmatmul.mubr.msk.f32.gmra.mxu0 %vm572_vm0, %v4610_v50 }
 0x36d   :  { %v1990_v56 = vadd.f32 %v1989_v46, %v4414_v26  ;;  %v2030_v15 = vmax.f32 %v1988_v61, 0.0  ;;  %v2022_v26 = vmax.f32 %v1982_v5, 0.0  ;;  %2378 = vmatprep.mubr.f32.mxu0 %v5030_v45  ;;  %v2004_v61 = vmax.f32 %v4589_v33, 0.0 }
 0x36e   :  { %v2029_v19 = vmax.f32 %v1895_v48, 0.0  ;;  %v4629_v8 = vadd.f32 %v2028_v44, %v4301_v31  ;;  %v2007_v31 = vmax.f32 %v1972_v42, 0.0  ;;  %v4645_v5 = vadd.f32 %v2020_v13, %v5166_v59  ;;  %v5168_v48 = vld [vmem:[#allocation13_spill] sm:$0xff]  ;;  %v5173_v13 = vld [vmem:[#allocation19_spill] sm:$0xff] }
 0x36f   :  { %v2031_v29 = vmax.f32 %v1990_v56, 0.0  ;;  %2924 = vmatmul.mubr.msk.f32.gmra.mxu1 %vm572_vm0, %v4610_v50  ;;  %v4640_v37 = vadd.f32 %v2030_v15, %v5165_v40  ;;  %v4654_v46 = vadd.f32 %v2013_v16, %v5168_v48  ;;  %v4657_v14 = vadd.f32 %v2022_v26, %v5169_v62  ;;  %v5170_v56 = vld [vmem:[#allocation18_spill] sm:$0xff] }
 0x370   :  { %v4623_v63 = vadd.f32 %v2029_v19, %v4295_v24  ;;  %2473 = vmatprep.mubr.f32.mxu1 %v5030_v45  ;;  %v4637_v24 = vadd.f32 %v2021_v43, %v4309_v53  ;;  %v1997_v53 = vmax.f32 %v4582_v27, 0.0  ;;  %v1996_v33 = vmax.f32 %v4576_v49, 0.0  ;;  %v5171_v43 = vld [vmem:[#allocation17_spill] sm:$0xff]  ;;  %v5172_v19 = vld [vmem:[#allocation8_spill] sm:$0xff]  ;;  %v5179_v40 = vld [vmem:[#allocation10_spill] sm:$0xff] }
 0x371   :  { %v4632_v20 = vadd.f32 %v2031_v29, %v4304_v0  ;;  %v5167_v0 = vld [vmem:[#allocation14_spill] sm:$0xff]  ;;  %v1999_v44 = vmax.f32 %v4586_v7, 0.0  ;;  %v4664_v39 = vadd.f32 %v2012_v11, %v5170_v56  ;;  %v4667_v27 = vadd.f32 %v2015_v10, %v5171_v43  ;;  %v5174_v49 = vld [vmem:[#allocation16_spill] sm:$0xff]  ;;  %v5177_v11 = vld [vmem:[#allocation11_spill] sm:$0xff] }
 0x372   :  { %5163 = vst [vmem:[#allocation25_spill] sm:$0xff] %v4623_v63  ;;  %2336 = vmatprep.subr.mxu0 %v4623_v63  ;;  %v4648_v29 = vadd.f32 %v2023_v30, %v5167_v0  ;;  %v1998_v15 = vmax.f32 %v4579_v17, 0.0  ;;  %v4673_v42 = vadd.f32 %v2005_v35, %v5172_v19  ;;  %v4676_v30 = vadd.f32 %v2014_v55, %v5173_v13  ;;  %v5176_v17 = vld [vmem:[#allocation20_spill] sm:$0xff]  ;;  %v5178_v35 = vld [vmem:[#allocation21_spill] sm:$0xff] }
 0x373   :  { %5164 = vst [vmem:[#allocation24_spill] sm:$0xff] %v4632_v20  ;;  %2431 = vmatprep.subr.mxu1 %v4632_v20  ;;  %2337 = vmatpush1.msra.mxu0 %v4629_v8  ;;  %v4681_v7 = vadd.f32 %v2004_v61, %v5174_v49  ;;  %v4684_v16 = vadd.f32 %v2007_v31, %v5175_v52  ;;  %v5180_v31 = vld [vmem:[#allocation23_spill] sm:$0xff] }
 0x374   :  { %2432 = vmatpush1.msra.mxu1 %v4640_v37  ;;  %2338 = vmatprep.subr.mxu0 %v4637_v24  ;;  %v4689_v26 = vadd.f32 %v1997_v53, %v5176_v17  ;;  %v4692_v10 = vadd.f32 %v2006_v25, %v5177_v11  ;;  %v4697_v55 = vadd.f32 %v1996_v33, %v5178_v35 }
 0x375   :  { %2433 = vmatprep.subr.mxu1 %v4648_v29  ;;  %2339 = vmatpush1.msra.mxu0 %v4645_v5  ;;  %v4700_v61 = vadd.f32 %v1999_v44, %v5179_v40  ;;  %v4705_v59 = vadd.f32 %v1998_v15, %v5180_v31 }
 0x376   :  { %2434 = vmatpush1.msra.mxu1 %v4657_v14  ;;  %2340 = vmatprep.subr.mxu0 %v4654_v46 }
 0x377   :  { %2435 = vmatprep.subr.mxu1 %v4667_v27  ;;  %2341 = vmatpush1.msra.mxu0 %v4664_v39 }
 0x378   :  { %2436 = vmatpush1.msra.mxu1 %v4676_v30  ;;  %2342 = vmatprep.subr.mxu0 %v4673_v42 }
 0x379   :  { %2437 = vmatprep.subr.mxu1 %v4684_v16  ;;  %2343 = vmatpush1.msra.mxu0 %v4681_v7 }
 0x37a   :  { %2438 = vmatpush1.msra.mxu1 %v4692_v10  ;;  %2344 = vmatprep.subr.mxu0 %v4689_v26 }
 0x37b   :  { %2439 = vmatprep.subr.mxu1 %v4700_v61  ;;  %2345 = vmatpush1.msra.mxu0 %v4697_v55 }
 0x37c   :  { %2440 = vmatpush1.msra.mxu1 %v4705_v59  ;;  %2925 = vmatmul.mubr.msk.f32.vlgmr.msra.gmra.mxu0 %vm572_vm0, %v4531_v32 }
 0x37d   :  { %2930 = vmatmul.mubr.msk.f32.vlgmr.msra.gmra.mxu1 %vm572_vm0, %v4531_v32  ;;  %2384 = vmatprep.mubr.f32.mxu0 %v5030_v45  ;;  %v4740_v32 = vpop.permute.xlu0 %2086 }
 0x37e   :  { %2479 = vmatprep.mubr.f32.mxu1 %v5030_v45 }
 0x380   :  { %2926 = vmatmul.mubr.msk.f32.gmra.mxu0 %vm572_vm0, %v4551_v2 }
 0x381   :  { %2931 = vmatmul.mubr.msk.f32.gmra.mxu1 %vm572_vm0, %v4551_v2  ;;  %2390 = vmatprep.mubr.f32.mxu0 %v5030_v45  ;;  %v4742_v2 = vpop.permute.xlu0 %2096 }
 0x382   :  { %2485 = vmatprep.mubr.f32.mxu1 %v5030_v45 }
 0x384   :  { %2927 = vmatmul.mubr.msk.f32.gmra.mxu0 %vm572_vm0, %v4562_v34 }
 0x385   :  { %2932 = vmatmul.mubr.msk.f32.gmra.mxu1 %vm572_vm0, %v4562_v34  ;;  %2396 = vmatprep.mubr.f32.mxu0 %v5030_v45  ;;  %v4744_v34 = vpop.permute.xlu1 %2091 }
 0x386   :  { %2491 = vmatprep.mubr.f32.mxu1 %v5030_v45 }
 0x388   :  { %2928 = vmatmul.mubr.msk.f32.gmra.mxu0 %vm572_vm0, %v4573_v18 }
 0x389   :  { %2933 = vmatmul.mubr.msk.f32.gmra.mxu1 %vm572_vm0, %v4573_v18  ;;  %2402 = vmatprep.mubr.f32.mxu0 %v5030_v45  ;;  %v4751_v44 = vpop.permute.xlu1 %2101 }
 0x38a   :  { %2497 = vmatprep.mubr.f32.mxu1 %v5030_v45  ;;  %v4748_v45 = vpop.permute.xlu0 %2106 }
 0x38c   :  { %2929 = vmatmul.mubr.msk.f32.gmra.mxu0 %vm572_vm0, %v4610_v50 }
 0x38d   :  { %2934 = vmatmul.mubr.msk.f32.gmra.mxu1 %vm572_vm0, %v4610_v50 }
 0x41c   :  { %v2190_v0 = vpop.f32.mrf.mxu0 }
 0x41d   :  { %v2191_v53 = vadd.f32 %v2190_v0, %v4740_v32 }
 0x41e   :  { %v2192_v48 = vpop.f32.mrf.mxu0 }
 0x41f   :  { %v2285_v18 = vpop.f32.mrf.mxu1  ;;  %v2193_v62 = vadd.f32 %v2192_v48, %v4740_v32  ;;  %v2504_v50 = vmax.f32 %v2191_v53, 0.0 }
 0x420   :  { %v2286_v25 = vadd.f32 %v2285_v18, %v4740_v32  ;;  %v2196_v15 = vpop.f32.mrf.mxu0 }
 0x421   :  { %v2287_v33 = vpop.f32.mrf.mxu1  ;;  %v2505_v19 = vmax.f32 %v2193_v62, 0.0  ;;  %v2197_v13 = vadd.f32 %v2196_v15, %v4744_v34  ;;  %v2544_v0 = vadd.f32 %v2504_v50, %v4521_v9  ;;  %v4760_v62 = vpop.permute.xlu0 %2596 }
 0x422   :  { %v2506_v56 = vmax.f32 %v2286_v25, 0.0  ;;  %v2288_v43 = vadd.f32 %v2287_v33, %v4740_v32  ;;  %v2198_v11 = vpop.f32.mrf.mxu0 }
 0x423   :  { %v2291_v49 = vpop.f32.mrf.mxu1  ;;  %v2512_v35 = vmax.f32 %v2197_v13, 0.0  ;;  %v2199_v40 = vadd.f32 %v2198_v11, %v4744_v34  ;;  %v2545_v33 = vadd.f32 %v2505_v19, %v4513_v28  ;;  %v4765_v11 = vpop.permute.xlu1 %2591 }
 0x424   :  { %v2507_v52 = vmax.f32 %v2288_v43, 0.0  ;;  %v2292_v17 = vadd.f32 %v2291_v49, %v4744_v34  ;;  %v2546_v53 = vadd.f32 %v2506_v56, %v4534_v6  ;;  %v2202_v48 = vpop.f32.mrf.mxu0 }
 0x425   :  { %v2293_v31 = vpop.f32.mrf.mxu1  ;;  %v2552_v43 = vadd.f32 %v2512_v35, %v4505_v58  ;;  %v2513_v15 = vmax.f32 %v2199_v40, 0.0  ;;  %v2203_v13 = vadd.f32 %v2202_v48, %v4742_v2 }
 0x426   :  { %v2514_v18 = vmax.f32 %v2292_v17, 0.0  ;;  %v2294_v25 = vadd.f32 %v2293_v31, %v4744_v34  ;;  %v2547_v9 = vadd.f32 %v2507_v52, %v4524_v23  ;;  %v2204_v17 = vpop.f32.mrf.mxu0  ;;  %v2614_v52 = vmul.f32 %v4765_v11, %v2544_v0 }
 0x427   :  { %v2297_v49 = vpop.f32.mrf.mxu1  ;;  %v2622_v31 = vmul.f32 %v4760_v62, %v2552_v43  ;;  %v2553_v28 = vadd.f32 %v2513_v15, %v4497_v41  ;;  %v2520_v19 = vmax.f32 %v2203_v13, 0.0  ;;  %v2205_v58 = vadd.f32 %v2204_v17, %v4742_v2 }
 0x428   :  { %v2554_v6 = vadd.f32 %v2514_v18, %v4516_v60  ;;  %v2515_v50 = vmax.f32 %v2294_v25, 0.0  ;;  %v2298_v56 = vadd.f32 %v2297_v49, %v4742_v2  ;;  %v2208_v60 = vpop.f32.mrf.mxu0  ;;  %v2616_v15 = vmul.f32 %v4765_v11, %v2546_v53 }
 0x429   :  { %v2299_v35 = vpop.f32.mrf.mxu1  ;;  %v2623_v18 = vmul.f32 %v4760_v62, %v2553_v28  ;;  %v2560_v25 = vadd.f32 %v2520_v19, %v4488_v47  ;;  %v2521_v43 = vmax.f32 %v2205_v58, 0.0  ;;  %v2209_v17 = vadd.f32 %v2208_v60, %v4751_v44  ;;  %v4786_v47 = vpop.permute.xlu1 %2601 }
 0x42a   :  { %v2624_v40 = vmul.f32 %v4760_v62, %v2554_v6  ;;  %v2555_v48 = vadd.f32 %v2515_v50, %v4508_v51  ;;  %v2522_v20 = vmax.f32 %v2298_v56, 0.0  ;;  %v2300_v23 = vadd.f32 %v2299_v35, %v4742_v2  ;;  %v2210_v51 = vpop.f32.mrf.mxu0 }
 0x42b   :  { %v2303_v41 = vpop.f32.mrf.mxu1  ;;  %v2615_v50 = vmul.f32 %v4765_v11, %v2545_v33  ;;  %v2617_v56 = vmul.f32 %v4765_v11, %v2547_v9  ;;  %v2561_v0 = vadd.f32 %v2521_v43, %v4478_v1  ;;  %v2654_v19 = vadd.f32 %v2622_v31, %v2614_v52 }
 0x42c   :  { %v2625_v13 = vmul.f32 %v4760_v62, %v2555_v48  ;;  %v2562_v49 = vadd.f32 %v2522_v20, %v4500_v21  ;;  %v2523_v6 = vmax.f32 %v2300_v23, 0.0  ;;  %v2674_v58 = vadd.f32 %v2624_v40, %v2616_v15  ;;  %v2214_v21 = vpop.f32.mrf.mxu0 }
 0x42d   :  { %v2305_v28 = vpop.f32.mrf.mxu1  ;;  %v2304_v35 = vadd.f32 %v2303_v41, %v4751_v44  ;;  %v2664_v20 = vadd.f32 %v2623_v18, %v2615_v50  ;;  %v2630_v48 = vmul.f32 %v4786_v47, %v2560_v25  ;;  %v2528_v33 = vmax.f32 %v2209_v17, 0.0  ;;  %v4797_v25 = vpop.permute.xlu0 %2606 }
 0x42e   :  { %v2563_v53 = vadd.f32 %v2523_v6, %v4491_v12  ;;  %v2211_v9 = vadd.f32 %v2210_v51, %v4751_v44  ;;  %v2684_v1 = vadd.f32 %v2625_v13, %v2617_v56  ;;  %v2632_v60 = vmul.f32 %v4786_v47, %v2562_v49  ;;  %v2216_v31 = vpop.f32.mrf.mxu0 }
 0x42f   :  { %v2309_v23 = vpop.f32.mrf.mxu1  ;;  %v2530_v43 = vmax.f32 %v2304_v35, 0.0  ;;  %v2306_v63 = vadd.f32 %v2305_v28, %v4751_v44  ;;  %v2631_v40 = vmul.f32 %v4786_v47, %v2561_v0  ;;  %v2568_v12 = vadd.f32 %v2528_v33, %v4469_v54  ;;  %v4810_v33 = vpop.permute.xlu1 %2611 }
 0x430   :  { %v2529_v52 = vmax.f32 %v2211_v9, 0.0  ;;  %v2215_v18 = vadd.f32 %v2214_v21, %v4748_v45  ;;  %v2633_v15 = vmul.f32 %v4786_v47, %v2563_v53  ;;  %v2310_v49 = vadd.f32 %v2309_v23, %v4748_v45 }
 0x431   :  { %v2311_v41 = vpop.f32.mrf.mxu1  ;;  %v2570_v13 = vadd.f32 %v2530_v43, %v4481_v57  ;;  %v2531_v6 = vmax.f32 %v2306_v63, 0.0  ;;  %v2638_v51 = vmul.f32 %v4797_v25, %v2568_v12  ;;  %v2217_v54 = vadd.f32 %v2216_v31, %v4748_v45 }
 0x432   :  { %v2569_v50 = vadd.f32 %v2529_v52, %v4462_v38  ;;  %v2536_v56 = vmax.f32 %v2215_v18, 0.0  ;;  %v2538_v28 = vmax.f32 %v2310_v49, 0.0  ;;  %v2312_v35 = vadd.f32 %v2311_v41, %v4748_v45 }
 0x433   :  { %v2640_v0 = vmul.f32 %v4797_v25, %v2570_v13  ;;  %v2571_v17 = vadd.f32 %v2531_v6, %v4472_v4  ;;  %v2655_v53 = vadd.f32 %v2654_v19, %v2630_v48  ;;  %v2537_v21 = vmax.f32 %v2217_v54, 0.0 }
 0x434   :  { %v2639_v57 = vmul.f32 %v4797_v25, %v2569_v50  ;;  %v2576_v63 = vadd.f32 %v2536_v56, %v4456_v22  ;;  %v2675_v9 = vadd.f32 %v2674_v58, %v2632_v60  ;;  %v2578_v23 = vadd.f32 %v2538_v28, %v4465_v3  ;;  %v5181_v22 = vld [vmem:[#allocation22_spill] sm:$0xff] }
 0x435   :  { %v2641_v38 = vmul.f32 %v4797_v25, %v2571_v17  ;;  %v2539_v43 = vmax.f32 %v2312_v35, 0.0  ;;  %v2665_v31 = vadd.f32 %v2664_v20, %v2631_v40  ;;  %v2656_v12 = vadd.f32 %v2655_v53, %v2638_v51 }
 0x436   :  { %v2646_v4 = vmul.f32 %v4810_v33, %v2576_v63  ;;  %v2577_v52 = vadd.f32 %v2537_v21, %v4453_v36  ;;  %v2685_v19 = vadd.f32 %v2684_v1, %v2633_v15  ;;  %v2676_v48 = vadd.f32 %v2675_v9, %v2640_v0 }
 0x437   :  { %v2648_v18 = vmul.f32 %v4810_v33, %v2578_v23  ;;  %v2579_v41 = vadd.f32 %v2539_v43, %v5181_v22  ;;  %v2666_v13 = vadd.f32 %v2665_v31, %v2639_v57 }
 0x438   :  { %v2657_v6 = vadd.f32 %v2656_v12, %v2646_v4  ;;  %v2647_v58 = vmul.f32 %v4810_v33, %v2577_v52  ;;  %v2686_v60 = vadd.f32 %v2685_v19, %v2641_v38 }
 0x439   :  { %v2677_v49 = vadd.f32 %v2676_v48, %v2648_v18  ;;  %v2649_v3 = vmul.f32 %v4810_v33, %v2579_v41 }
 0x43a   :  { %v2658_v20 = vrot.slane %v2657_v6, 4  ;;  %v2667_v40 = vadd.f32 %v2666_v13, %v2647_v58 }
 0x43b   :  { %v2678_v50 = vrot.slane %v2677_v49, 4  ;;  %v2687_v56 = vadd.f32 %v2686_v60, %v2649_v3 }
 0x43c   :  { %v2380_v51 = vpop.f32.mrf.mxu0  ;;  %v2659_v15 = vadd.f32 %v2658_v20, %v2657_v6  ;;  %v2668_v54 = vrot.slane %v2667_v40, 4 }
 0x43d   :  { %v2381_v36 = vadd.f32 %v2380_v51, %v4740_v32  ;;  %v2475_v1 = vpop.f32.mrf.mxu1  ;;  %v2679_v28 = vadd.f32 %v2678_v50, %v2677_v49  ;;  %v2688_v35 = vrot.slane %v2687_v56, 4 }
 0x43e   :  { %v2476_v0 = vadd.f32 %v2475_v1, %v4740_v32  ;;  %v2382_v17 = vpop.f32.mrf.mxu0  ;;  %v2669_v21 = vadd.f32 %v2668_v54, %v2667_v40  ;;  %v2660_v43 = vrot.slane %v2659_v15, 2 }
 0x43f   :  { %v2508_v53 = vmax.f32 %v2381_v36, 0.0  ;;  %v2383_v57 = vadd.f32 %v2382_v17, %v4740_v32  ;;  %v2477_v63 = vpop.f32.mrf.mxu1  ;;  %v2689_v31 = vadd.f32 %v2688_v35, %v2687_v56  ;;  %v2680_v4 = vrot.slane %v2679_v28, 2 }
 0x440   :  { %v2510_v9 = vmax.f32 %v2476_v0, 0.0  ;;  %v2478_v38 = vadd.f32 %v2477_v63, %v4740_v32  ;;  %v2386_v23 = vpop.f32.mrf.mxu0  ;;  %v2670_v18 = vrot.slane %v2669_v21, 2  ;;  %v4826_v58 = vadd.f32 %v2660_v43, %v2659_v15 }
 0x441   :  { %v2481_v12 = vpop.f32.mrf.mxu1  ;;  %v2548_v52 = vadd.f32 %v2508_v53, %v4697_v55  ;;  %v2509_v19 = vmax.f32 %v2383_v57, 0.0  ;;  %v2690_v60 = vrot.slane %v2689_v31, 2  ;;  %v2387_v32 = vadd.f32 %v2386_v23, %v4744_v34 }
 0x442   :  { %v2388_v48 = vpop.f32.mrf.mxu0  ;;  %v2550_v22 = vadd.f32 %v2510_v9, %v4705_v59  ;;  %v2511_v13 = vmax.f32 %v2478_v38, 0.0  ;;  %v4829_v3 = vadd.f32 %v2680_v4, %v2679_v28  ;;  %v2482_v40 = vadd.f32 %v2481_v12, %v4744_v34 }
 0x443   :  { %v2483_v41 = vpop.f32.mrf.mxu1  ;;  %v2618_v20 = vmul.f32 %v4765_v11, %v2548_v52  ;;  %v2549_v55 = vadd.f32 %v2509_v19, %v4689_v26  ;;  %v4834_v50 = vadd.f32 %v2670_v18, %v2669_v21  ;;  %v2516_v56 = vmax.f32 %v2387_v32, 0.0 }
 0x444   :  { %v2392_v6 = vpop.f32.mrf.mxu0  ;;  %v2620_v59 = vmul.f32 %v4765_v11, %v2550_v22  ;;  %v2389_v36 = vadd.f32 %v2388_v48, %v4744_v34  ;;  %v2551_v15 = vadd.f32 %v2511_v13, %v4700_v61  ;;  %v2518_v54 = vmax.f32 %v2482_v40, 0.0 }
 0x445   :  { %v2487_v49 = vpop.f32.mrf.mxu1  ;;  %v2484_v0 = vadd.f32 %v2483_v41, %v4744_v34  ;;  %v2393_v17 = vadd.f32 %v2392_v6, %v4742_v2  ;;  %v4841_v26 = vadd.f32 %v2690_v60, %v2689_v31  ;;  %v2556_v35 = vadd.f32 %v2516_v56, %v4681_v7 }
 0x446   :  { %v2394_v51 = vpop.f32.mrf.mxu0  ;;  %v2517_v53 = vmax.f32 %v2389_v36, 0.0  ;;  %v2488_v57 = vadd.f32 %v2487_v49, %v4742_v2  ;;  %v2558_v21 = vadd.f32 %v2518_v54, %v4692_v10  ;;  %v2619_v48 = vmul.f32 %v4765_v11, %v2549_v55 }
 0x447   :  { %v2489_v1 = vpop.f32.mrf.mxu1  ;;  %v2519_v9 = vmax.f32 %v2484_v0, 0.0  ;;  %v2524_v38 = vmax.f32 %v2393_v17, 0.0  ;;  %v2395_v61 = vadd.f32 %v2394_v51, %v4742_v2  ;;  %v2626_v34 = vmul.f32 %v4760_v62, %v2556_v35 }
 0x448   :  { %v2398_v28 = vpop.f32.mrf.mxu0  ;;  %v2557_v43 = vadd.f32 %v2517_v53, %v4673_v42  ;;  %v2526_v12 = vmax.f32 %v2488_v57, 0.0  ;;  %v2490_v31 = vadd.f32 %v2489_v1, %v4742_v2  ;;  %v2628_v7 = vmul.f32 %v4760_v62, %v2558_v21 }
 0x449   :  { %v2493_v63 = vpop.f32.mrf.mxu1  ;;  %v2559_v52 = vadd.f32 %v2519_v9, %v4684_v16  ;;  %v2564_v19 = vadd.f32 %v2524_v38, %v4664_v39  ;;  %v2525_v10 = vmax.f32 %v2395_v61, 0.0  ;;  %v2621_v42 = vmul.f32 %v4765_v11, %v2551_v15 }
 0x44a   :  { %v2400_v23 = vpop.f32.mrf.mxu0  ;;  %v2627_v18 = vmul.f32 %v4760_v62, %v2557_v43  ;;  %v2566_v22 = vadd.f32 %v2526_v12, %v4676_v30  ;;  %v2527_v41 = vmax.f32 %v2490_v31, 0.0  ;;  %v2694_v32 = vadd.f32 %v2626_v34, %v2618_v20 }
 0x44b   :  { %v2495_v4 = vpop.f32.mrf.mxu1  ;;  %v2629_v2 = vmul.f32 %v4760_v62, %v2559_v52  ;;  %v2634_v6 = vmul.f32 %v4786_v47, %v2564_v19  ;;  %v2565_v60 = vadd.f32 %v2525_v10, %v4654_v46  ;;  %v2399_v55 = vadd.f32 %v2398_v28, %v4751_v44  ;;  %v5182_v52 = vld [vmem:[#allocation25_spill] sm:$0xff] }
 0x44c   :  { %v2404_v13 = vpop.f32.mrf.mxu0  ;;  %v2636_v39 = vmul.f32 %v4786_v47, %v2566_v22  ;;  %v2567_v49 = vadd.f32 %v2527_v41, %v4667_v27  ;;  %v2714_v40 = vadd.f32 %v2628_v7, %v2620_v59  ;;  %v2704_v30 = vadd.f32 %v2627_v18, %v2619_v48  ;;  %v5183_v48 = vld [vmem:[#allocation24_spill] sm:$0xff] }
 0x44d   :  { %v2499_v16 = vpop.f32.mrf.mxu1  ;;  %v2724_v51 = vadd.f32 %v2629_v2, %v2621_v42  ;;  %v2494_v56 = vadd.f32 %v2493_v63, %v4751_v44  ;;  %v2695_v11 = vadd.f32 %v2694_v32, %v2634_v6  ;;  %v2635_v62 = vmul.f32 %v4786_v47, %v2565_v60 }
 0x44e   :  { %v2532_v36 = vmax.f32 %v2399_v55, 0.0  ;;  %v2401_v1 = vadd.f32 %v2400_v23, %v4751_v44  ;;  %v2406_v46 = vpop.f32.mrf.mxu0  ;;  %v2715_v15 = vadd.f32 %v2714_v40, %v2636_v39  ;;  %v2496_v54 = vadd.f32 %v2495_v4, %v4751_v44 }
 0x44f   :  { %v2534_v20 = vmax.f32 %v2494_v56, 0.0  ;;  %v2405_v27 = vadd.f32 %v2404_v13, %v4748_v45  ;;  %v2501_v0 = vpop.f32.mrf.mxu1  ;;  %v2637_v59 = vmul.f32 %v4786_v47, %v2567_v49  ;;  %v2500_v35 = vadd.f32 %v2499_v16, %v4748_v45  ;;  %v2738_v16 = vpop.permute.xlu0 %2737 }
 0x450   :  { %v2572_v17 = vadd.f32 %v2532_v36, %v4645_v5  ;;  %v2533_v28 = vmax.f32 %v2401_v1, 0.0  ;;  %v2535_v57 = vmax.f32 %v2496_v54, 0.0  ;;  %v2407_v21 = vadd.f32 %v2406_v46, %v4748_v45 }
 0x451   :  { %v2574_v53 = vadd.f32 %v2534_v20, %v4657_v14  ;;  %v2540_v63 = vmax.f32 %v2405_v27, 0.0  ;;  %v2542_v38 = vmax.f32 %v2500_v35, 0.0  ;;  %v2502_v61 = vadd.f32 %v2501_v0, %v4748_v45 }
 0x452   :  { %v2642_v9 = vmul.f32 %v4797_v25, %v2572_v17  ;;  %v2573_v44 = vadd.f32 %v2533_v28, %v4637_v24  ;;  %v2575_v5 = vadd.f32 %v2535_v57, %v4648_v29  ;;  %v2541_v34 = vmax.f32 %v2407_v21, 0.0 }
 0x453   :  { %v2644_v47 = vmul.f32 %v4797_v25, %v2574_v53  ;;  %v2580_v23 = vadd.f32 %v2540_v63, %v4629_v8  ;;  %v2705_v43 = vadd.f32 %v2704_v30, %v2635_v62  ;;  %v2582_v12 = vadd.f32 %v2542_v38, %v4640_v37 }
 0x454   :  { %v2643_v14 = vmul.f32 %v4797_v25, %v2573_v44  ;;  %v2543_v31 = vmax.f32 %v2502_v61, 0.0  ;;  %v2696_v4 = vadd.f32 %v2695_v11, %v2642_v9  ;;  %v2645_v7 = vmul.f32 %v4797_v25, %v2575_v5 }
 0x455   :  { %v2650_v24 = vmul.f32 %v4810_v33, %v2580_v23  ;;  %v2581_v45 = vadd.f32 %v2541_v34, %v5182_v52  ;;  %v2725_v19 = vadd.f32 %v2724_v51, %v2637_v59  ;;  %v2716_v10 = vadd.f32 %v2715_v15, %v2644_v47 }
 0x456   :  { %v2652_v29 = vmul.f32 %v4810_v33, %v2582_v12  ;;  %v2583_v8 = vadd.f32 %v2543_v31, %v5183_v48  ;;  %v2672_v18 = vrot.slane %v4834_v50, 1  ;;  %v2706_v22 = vadd.f32 %v2705_v43, %v2643_v14 }
 0x457   :  { %v2697_v41 = vadd.f32 %v2696_v4, %v2650_v24  ;;  %v2651_v37 = vmul.f32 %v4810_v33, %v2581_v45  ;;  %v2692_v13 = vrot.slane %v4841_v26, 1  ;;  %v2726_v42 = vadd.f32 %v2725_v19, %v2645_v7 }
 0x458   :  { %v2717_v25 = vadd.f32 %v2716_v10, %v2652_v29  ;;  %v2653_v2 = vmul.f32 %v4810_v33, %v2583_v8  ;;  %v2662_v32 = vrot.slane %v4826_v58, 1  ;;  %v2682_v39 = vrot.slane %v4829_v3, 1  ;;  %v5184_v33 = vld [vmem:[#allocation7_spill] sm:$0xff] }
 0x459   :  { %v2698_v6 = vrot.slane %v2697_v41, 4  ;;  %v2707_v60 = vadd.f32 %v2706_v22, %v2651_v37  ;;  %v2974_v51 = vmov 1966171168   ;;  %v2673_v11 = vadd.f32 %v2672_v18, %v4834_v50 }
 0x45a   :  { %v2718_v49 = vrot.slane %v2717_v25, 4  ;;  %v2727_v55 = vadd.f32 %v2726_v42, %v2653_v2  ;;  %v2765_v56 = vunpack.c.l.s4 %v2974_v51  ;;  %v2693_v62 = vadd.f32 %v2692_v13, %v4841_v26 }
 0x45b   :  { %v2699_v40 = vadd.f32 %v2698_v6, %v2697_v41  ;;  %v2708_v30 = vrot.slane %v2707_v60, 4  ;;  %v2743_v46 = vrot.slane %v2738_v16, %v5184_v33  ;;  %v2663_v54 = vadd.f32 %v2662_v32, %v4826_v58  ;;  %v5185_v58 = vld [vmem:[#allocation6_spill] sm:$0xff] }
 0x45c   :  { %v2719_v36 = vadd.f32 %v2718_v49, %v2717_v25  ;;  %v2728_v1 = vrot.slane %v2727_v55, 4  ;;  %v2683_v27 = vadd.f32 %v2682_v39, %v4829_v3  ;;  %v2766_v35 = vunpack.c.0.s8 %v2765_v56 }
 0x45d   :  { %v2700_v15 = vrot.slane %v2699_v40, 2  ;;  %v2709_v20 = vadd.f32 %v2708_v30, %v2707_v60  ;;  %v2745_v50 = vadd.f32 %v2743_v46, %v2673_v11  ;;  %v2747_v63 = vadd.f32 %v2743_v46, %v2693_v62 }
 0x45e   :  { %v2720_v0 = vrot.slane %v2719_v36, 2  ;;  %v2729_v59 = vadd.f32 %v2728_v1, %v2727_v55  ;;  %v2744_v38 = vadd.f32 %v2743_v46, %v2663_v54  ;;  %v2746_v61 = vadd.f32 %v2743_v46, %v2683_v27 }
 0x45f   :  { %v2701_v17 = vadd.f32 %v2700_v15, %v2699_v40  ;;  %v2710_v28 = vrot.slane %v2709_v20, 2  ;;  %v2769_v23 = vsub.s32 %v2766_v35, %v5185_v58 }
 0x460   :  { %v2721_v53 = vadd.f32 %v2720_v0, %v2719_v36  ;;  %v2730_v57 = vrot.slane %v2729_v59, 2  ;;  %v2760_v43 = vcombine.low %v2744_v38, %v2745_v50  ;;  %v2761_v14 = vcombine.low %v2746_v61, %v2747_v63 }
 0x461   :  { %v2702_v26 = vrot.slane %v2701_v17, 1  ;;  %v2711_v21 = vadd.f32 %v2710_v28, %v2709_v20 }
 0x462   :  { %v2722_v9 = vrot.slane %v2721_v53, 1  ;;  %v2731_v44 = vadd.f32 %v2730_v57, %v2729_v59  ;;  %v2770_v45 = vrot.slane %v2760_v43, %v2769_v23  ;;  %v2777_v19 = vrot.slane %v2761_v14, %v2769_v23 }
 0x463   :  { %v2703_v47 = vadd.f32 %v2702_v26, %v2701_v17  ;;  %v2712_v5 = vrot.slane %v2711_v21, 1 }
 0x464   :  { %v2723_v3 = vadd.f32 %v2722_v9, %v2721_v53  ;;  %v2732_v34 = vrot.slane %v2731_v44, 1  ;;  %v2792_v18 = vcombine.low %v2770_v45, %v2777_v19 }
 0x465   :  { %v2713_v12 = vadd.f32 %v2712_v5, %v2711_v21  ;;  %v2748_v4 = vadd.f32 %v2743_v46, %v2703_v47 }
 0x466   :  { %v2733_v31 = vadd.f32 %v2732_v34, %v2731_v44  ;;  %v2750_v24 = vadd.f32 %v2743_v46, %v2723_v3  ;;  %v2800_v41 = vrot.slane %v2792_v18, %v2769_v23 }
 0x467   :  { %v2749_v7 = vadd.f32 %v2743_v46, %v2713_v12 }
 0x468   :  { %v2751_v52 = vadd.f32 %v2743_v46, %v2733_v31 }
 0x469   :  { %v2762_v10 = vcombine.low %v2748_v4, %v2749_v7 }
 0x46a   :  { %v2763_v29 = vcombine.low %v2750_v24, %v2751_v52 }
 0x46b   :  { %v2784_v48 = vrot.slane %v2762_v10, %v2769_v23 }
 0x46c   :  { %v2791_v8 = vrot.slane %v2763_v29, %v2769_v23 }
 0x46e   :  { %v2793_v22 = vcombine.low %v2784_v48, %v2791_v8 }
 0x470   :  { %v2807_v37 = vrot.slane %v2793_v22, %v2769_v23 }
 0x472   :  { %v2808_v13 = vcombine.low %v2800_v41, %v2807_v37 }
 0x474   :  { %2810 = vst [vmem:[#allocation3] sm:$0xff] %v2808_v13 }
 0x475   :  { %2960 = shalt.err (!%p2957_p4)
}
 0x476   :  { %2820 = dma.vmem_to_hbm [thread:$0]  %s2818_s8, 128, %s4908_s7, [#allocation4]  }
 0x477   :  { %2969 = dma.done.wait [#allocation4], 128  }
 0x478   :  { %2970 = vsyncadd [#allocation4], 4294967168 }
 0x479   :  { %2824 = vsyncpa [#allocation4], 1 }

</bundles_post_ra>
